<compile_context>
chip_gen: v7x
topology: tpu7x:2x2x1
jax: 0.10.0
libtpu: 0.0.40
codegen_flags: <defaults>
</compile_context>

<pallas_src>
import jax
import jax.numpy as jnp
from jax.experimental import pallas as pl
from jax.experimental.pallas import tpu as pltpu


def _round_up(x, m):
    return (x + m - 1) // m * m


def pfn_kernel(x_ref, w_ref, shift_ref, o_ref):
    # x_ref:     (tile_m*P, C_in)  bf16 -- rows m*P .. m*P+P-1 belong to pillar m
    # w_ref:     (C_in, C_out)     bf16 -- BN scale already folded in
    # shift_ref: (1, C_out)        f32  -- folded BN shift = beta - mean*scale
    # o_ref:     (tile_m, C_out)   f32  -- per-pillar max feature
    rows, _ = x_ref.shape
    tm, c_out = o_ref.shape
    p = rows // tm

    w = w_ref[...]           # hoisted: loaded once per tile
    shift = shift_ref[...]   # (1, C_out) f32

    # Process pillars in chunks so the (chunk*P, C_out) f32 matmul intermediate
    # stays small (<= 256*8*64*4 = 512 KiB), independent of tile_m.
    cm = tm if (tm <= 256 or tm % 256 != 0) else 256
    n_chunks = tm // cm

    for c in range(n_chunks):  # small static trip count, unrolled at trace time
        xc = x_ref[pl.ds(c * cm * p, cm * p), :]                 # (cm*P, C_in) bf16
        y = jnp.dot(xc, w, preferred_element_type=jnp.float32)   # (cm*P, C_out) f32
        y = y.reshape(cm, p, c_out)                               # layout-compatible (P == sublane tile)
        ymax = jnp.max(y, axis=1)                                 # (cm, C_out) max over points
        o = jnp.maximum(ymax + shift, 0.0)                        # BN shift + ReLU
        o_ref[pl.ds(c * cm, cm), :] = o.astype(o_ref.dtype)


def pfn_layer(inputs, weight, gamma, beta, running_mean, running_var,
              eps=1e-3, tile_m=1024):
    """inputs: (M, P, C_in) float32.  weight: (C_out, C_in) (PyTorch layout).

    Returns (M, 1, C_out) float32, matching PFNLayer.forward (eval-mode BN).
    """
    M, P, C_in = inputs.shape
    C_out = weight.shape[0]
    f32 = jnp.float32

    # Fold eval-mode BatchNorm: scale goes into the weight, shift stays as a
    # per-channel epilogue add inside the kernel.
    inv_std = jax.lax.rsqrt(running_var.astype(f32) + eps)
    scale = gamma.astype(f32) * inv_std                                   # (C_out,)
    shift = (beta.astype(f32) - running_mean.astype(f32) * scale).reshape(1, C_out)
    w_scaled = (weight.astype(f32).T * scale[None, :]).astype(jnp.bfloat16)  # (C_in, C_out)

    # Tile sizing: big tiles amortize the ~0.35us per-grid-step overhead;
    # clamp for small M so we don't pad excessively.  Keep a multiple of 8.
    tile_m = max(8, min(int(tile_m), _round_up(M, 8)))
    tile_m = _round_up(tile_m, 8)
    M_pad = _round_up(M, tile_m)

    # bf16 streaming of activations; zero-pad pillars up to a tile multiple
    # (pad rows produce values that are sliced off below).
    x = inputs.astype(jnp.bfloat16)
    if M_pad != M:
        x = jnp.pad(x, ((0, M_pad - M), (0, 0), (0, 0)))
    # Wrapper-side flatten: identical HBM layout, so the DMA is unchanged and
    # the kernel never reshapes its input.
    x2d = x.reshape(M_pad * P, C_in)

    grid = (M_pad // tile_m,)
    out2d = pl.pallas_call(
        pfn_kernel,
        out_shape=jax.ShapeDtypeStruct((M_pad, C_out), jnp.float32),
        grid_spec=pltpu.PrefetchScalarGridSpec(
            num_scalar_prefetch=0,
            grid=grid,
            in_specs=[
                pl.BlockSpec((tile_m * P, C_in), lambda i: (i, 0)),
                pl.BlockSpec((C_in, C_out), lambda i: (0, 0)),
                pl.BlockSpec((1, C_out), lambda i: (0, 0)),
            ],
            out_specs=pl.BlockSpec((tile_m, C_out), lambda i: (i, 0)),
        ),
        compiler_params=pltpu.CompilerParams(
            dimension_semantics=("parallel",),      # shards across v7x's 2 TCs
            vmem_limit_bytes=32 * 1024 * 1024,
        ),
    )(x2d, w_scaled, shift)

    # Restore the (M, 1, C_out) keepdim shape outside the kernel.
    return out2d[:M].reshape(M, 1, C_out)


def pfn_layer_ref(inputs, weight, gamma, beta, running_mean, running_var, eps=1e-3):
    """Pure-JAX f32 reference mirroring the PyTorch forward (eval-mode BN)."""
    x = jnp.einsum('mpc,oc->mpo', inputs, weight,
                   precision=jax.lax.Precision.HIGHEST)
    x = (x - running_mean) * jax.lax.rsqrt(running_var + eps) * gamma + beta
    x = jnp.maximum(x, 0.0)
    return jnp.max(x, axis=1, keepdims=True)


def pfn_layer_ref_bf16(inputs, weight, gamma, beta, running_mean, running_var, eps=1e-3):
    """Reference that emulates the kernel's bf16-input / folded-weight math."""
    f32 = jnp.float32
    inv_std = jax.lax.rsqrt(running_var.astype(f32) + eps)
    scale = gamma.astype(f32) * inv_std
    shift = beta.astype(f32) - running_mean.astype(f32) * scale
    w_s = (weight.astype(f32).T * scale[None, :]).astype(jnp.bfloat16).astype(f32)
    x = inputs.astype(jnp.bfloat16).astype(f32)
    y = jnp.einsum('mpc,co->mpo', x, w_s, precision=jax.lax.Precision.HIGHEST)
    y = jnp.max(y, axis=1, keepdims=True) + shift
    return jnp.maximum(y, 0.0)


if __name__ == "__main__":
    key = jax.random.PRNGKey(0)
    k_in, k_w, k_g, k_b, k_m, k_v = jax.random.split(key, 6)

    # Small shapes consistent with PFNLayer; M is not a multiple of 8 to
    # exercise the padding path.
    M, P, C_in, C_out = 100, 8, 9, 64

    inputs = jax.random.normal(k_in, (M, P, C_in), dtype=jnp.float32)
    weight = jax.random.normal(k_w, (C_out, C_in), dtype=jnp.float32) * 0.1
    gamma = 1.0 + 0.05 * jax.random.normal(k_g, (C_out,), dtype=jnp.float32)
    beta = 0.05 * jax.random.normal(k_b, (C_out,), dtype=jnp.float32)
    running_mean = 0.1 * jax.random.normal(k_m, (C_out,), dtype=jnp.float32)
    running_var = jnp.abs(1.0 + 0.1 * jax.random.normal(k_v, (C_out,), dtype=jnp.float32))

    out = pfn_layer(inputs, weight, gamma, beta, running_mean, running_var)
    out = jax.block_until_ready(out)
    assert out.shape == (M, 1, C_out), out.shape

    # Tight check vs. a reference with the kernel's exact precision recipe.
    ref_bf16 = pfn_layer_ref_bf16(inputs, weight, gamma, beta,
                                  running_mean, running_var)
    assert jnp.allclose(out, ref_bf16, atol=1e-3, rtol=1e-3), \
        float(jnp.max(jnp.abs(out - ref_bf16)))

    # Loose check vs. the exact f32 PyTorch-equivalent reference (bf16 input
    # streaming bounds the difference).
    ref = pfn_layer_ref(inputs, weight, gamma, beta, running_mean, running_var)
    assert jnp.allclose(out, ref, atol=5e-2, rtol=5e-2), \
        float(jnp.max(jnp.abs(out - ref)))

    print("KERNEL_OK")
</pallas_src>

<mosaic_0001>
module attributes {stable_mosaic.version = 11 : i64} {
  func.func @pfn_kernel(%arg0: i32, %arg1: memref<832x9xbf16, #tpu.memory_space<vmem>>, %arg2: memref<9x64xbf16, #tpu.memory_space<vmem>>, %arg3: memref<1x64xf32, #tpu.memory_space<vmem>>, %arg4: memref<104x64xf32, #tpu.memory_space<vmem>>) attributes {dimension_semantics = [#tpu.dimension_semantics<parallel>], iteration_bounds = array<i64: 1>, scalar_prefetch = 0 : i64, scratch_operands = 0 : i64, tpu.core_type = #tpu.core_type<tc>, window_params = [{transform_indices = @transform_0, window_bounds = array<i64: 832, 9>}, {pipeline_mode = #tpu.pipeline_mode<synchronous>, transform_indices = @transform_1, window_bounds = array<i64: 9, 64>}, {pipeline_mode = #tpu.pipeline_mode<synchronous>, transform_indices = @transform_2, window_bounds = array<i64: 1, 64>}, {transform_indices = @transform_3, window_bounds = array<i64: 104, 64>}]} {
    %c0 = arith.constant 0 : index
    %c0_0 = arith.constant 0 : index
    %0 = vector.load %arg2[%c0, %c0_0] : memref<9x64xbf16, #tpu.memory_space<vmem>>, vector<9x64xbf16>
    %c0_1 = arith.constant 0 : index
    %c0_2 = arith.constant 0 : index
    %1 = vector.load %arg3[%c0_1, %c0_2] : memref<1x64xf32, #tpu.memory_space<vmem>>, vector<1x64xf32>
    %c0_3 = arith.constant 0 : index
    %c0_4 = arith.constant 0 : index
    %2 = vector.load %arg1[%c0_3, %c0_4] : memref<832x9xbf16, #tpu.memory_space<vmem>>, vector<832x9xbf16>
    %cst = arith.constant dense<0.000000e+00> : vector<832x64xf32>
    %3 = tpu.matmul %2, %0, %cst {dimension_numbers = #tpu.dot_dimension_numbers<[1], [0], [0], [1], [0, 0, 1, 1], [], []>} : vector<832x9xbf16>, vector<9x64xbf16>, vector<832x64xf32> -> vector<832x64xf32>
    %4 = vector.shape_cast %3 : vector<832x64xf32> to vector<104x8x64xf32>
    %cst_5 = arith.constant dense<0xFF800000> : vector<104x64xf32>
    %5 = vector.multi_reduction <maximumf>, %4, %cst_5 [1] : vector<104x8x64xf32> to vector<104x64xf32>
    %6 = vector.broadcast %1 : vector<1x64xf32> to vector<104x64xf32>
    %7 = arith.addf %5, %6 : vector<104x64xf32>
    %cst_6 = arith.constant 0.000000e+00 : f32
    %8 = vector.broadcast %cst_6 : f32 to vector<104x64xf32>
    %9 = arith.maximumf %7, %8 : vector<104x64xf32>
    %c0_7 = arith.constant 0 : index
    %c0_8 = arith.constant 0 : index
    %10 = vector.load %arg4[%c0_7, %c0_8] : memref<104x64xf32, #tpu.memory_space<vmem>>, vector<104x64xf32>
    tpu.vector_store %arg4[%c0_7, %c0_8], %9 {strides = array<i32>} : memref<104x64xf32, #tpu.memory_space<vmem>>, vector<104x64xf32>,
    return
  }
  func.func @transform_0(%arg0: i32) -> (i32, i32) {
    %c0_i32 = arith.constant 0 : i32
    %c0_i32_0 = arith.constant 0 : i32
    return %arg0, %c0_i32 : i32, i32
  }
  func.func @transform_1(%arg0: i32) -> (i32, i32) {
    %c0_i32 = arith.constant 0 : i32
    %c0_i32_0 = arith.constant 0 : i32
    %c0_i32_1 = arith.constant 0 : i32
    return %c0_i32, %c0_i32_0 : i32, i32
  }
  func.func @transform_2(%arg0: i32) -> (i32, i32) {
    %c0_i32 = arith.constant 0 : i32
    %c0_i32_0 = arith.constant 0 : i32
    %c0_i32_1 = arith.constant 0 : i32
    return %c0_i32, %c0_i32_0 : i32, i32
  }
  func.func @transform_3(%arg0: i32) -> (i32, i32) {
    %c0_i32 = arith.constant 0 : i32
    %c0_i32_0 = arith.constant 0 : i32
    return %arg0, %c0_i32 : i32, i32
  }
}

</mosaic_0001>

<bundles_post_ra>
// kernel: tpu_custom_call.1
= control target key start
LH: loop header
LB: loop body
LE: loop exit
PB: predicated region body
PF: predicated region fallthrough
CT: control target
= control target key end

     0   :  { %vm544_vm0 = vcmask 1043456   ;;  %vm545_vm1 = vcmask 1044480   ;;  %vm387_vm2 = vcmask 72704   ;;  %v2589_v1 = vmov 65535   ;;  %s3578_s1 = inlined_call_operand.vmem [shape: bf16[9,64], index: 1, kind: input, shape index: {}]   ;;  %s3579_s0 = inlined_call_operand.vmem [shape: bf16[832,9], index: 0, kind: input, shape index: {}]   ;;  %s3580_s2 = inlined_call_operand.vmem [shape: f32[1,64], index: 2, kind: input, shape index: {}]   ;;  %s3581_s3 = inlined_call_operand.vmem [shape: f32[104,64], index: 3, kind: output, shape index: {}]  }
   0x1   :  { %v2534_v0 = vld [vmem:[%s3578_s1] sm:$0x1f]   ;;  %v546_v2 = vsel %vm544_vm0, 4294967295, %v2589_v1  ;;  %v2536_v5 = vld [vmem:[%s3579_s0 + $0xd0] sm:$0xff]   ;;  %v2537_v7 = vld [vmem:[%s3579_s0 + $0x8] sm:$0xff]   ;;  %vm1000_vm3 = vcmask 523264  }
   0x2   :  { %v2535_v3 = vld [vmem:[%s3579_s0] sm:$0xff]   ;;  %v547_v4 = vsel %vm545_vm1, %v546_v2, 0  ;;  %2479 = vmatprep.mubr.msk.bf16.mxu1 %vm387_vm2, %v2536_v5  ;;  %v2538_v8 = vld [vmem:[%s3579_s0 + $0xd8] sm:$0xff]   ;;  %v2539_v9 = vld [vmem:[%s3579_s0 + $0x10] sm:$0xff]   ;;  %vm2048_vm4 = vcmask 1041409   ;;  %vm2051_vm5 = vcmask 1042434  }
   0x3   :  { %v549_v6 = vand.u32 %v2534_v0, %v547_v4  ;;  %2427 = vmatprep.mubr.msk.bf16.mxu0 %vm387_vm2, %v2535_v3  ;;  %v2540_v10 = vld [vmem:[%s3579_s0 + $0xe0] sm:$0xff]   ;;  %v2541_v11 = vld [vmem:[%s3579_s0 + $0x18] sm:$0xff]   ;;  %v2542_v12 = vld [vmem:[%s3579_s0 + $0xe8] sm:$0xff]   ;;  %vm2054_vm6 = vcmask 1043459   ;;  %vm2057_vm7 = vcmask 1044484   ;;  %vm2060_vm8 = vcmask 1045509  }
   0x4   :  { %v2543_v13 = vld [vmem:[%s3579_s0 + $0x20] sm:$0xff]   ;;  %v2544_v14 = vld [vmem:[%s3579_s0 + $0xf0] sm:$0xff]   ;;  %v2545_v15 = vld [vmem:[%s3579_s0 + $0x28] sm:$0xff]   ;;  %vm2063_vm9 = vcmask 1046534   ;;  %vm2066_vm10 = vcmask 1047559  }
   0x5   :  { %2425 = vmatprep.subr.bf16.mxu0 %v549_v6  ;;  %2531 = vmatprep.subr.bf16.mxu1 %v549_v6  ;;  %v2546_v16 = vld [vmem:[%s3579_s0 + $0xf8] sm:$0xff]   ;;  %v2547_v17 = vld [vmem:[%s3579_s0 + $0x30] sm:$0xff]   ;;  %v2548_v18 = vld [vmem:[%s3579_s0 + $0x100] sm:$0xff]  }
   0x6   :  { %2426 = vmatpush3.bf16.msra.mxu0 %v549_v6  ;;  %2532 = vmatpush3.bf16.msra.mxu1 %v549_v6  ;;  %v2549_v19 = vld [vmem:[%s3579_s0 + $0x38] sm:$0xff]   ;;  %v2550_v20 = vld [vmem:[%s3579_s0 + $0x108] sm:$0xff]   ;;  %v2551_v21 = vld [vmem:[%s3579_s0 + $0x40] sm:$0xff]  }
   0x7   :  { %v2552_v22 = vld [vmem:[%s3579_s0 + $0x110] sm:$0xff]   ;;  %v2553_v23 = vld [vmem:[%s3579_s0 + $0x48] sm:$0xff]   ;;  %v2554_v24 = vld [vmem:[%s3579_s0 + $0x118] sm:$0xff]  }
   0x8   :  { %v2555_v25 = vld [vmem:[%s3579_s0 + $0x50] sm:$0xff]   ;;  %v2556_v26 = vld [vmem:[%s3579_s0 + $0x120] sm:$0xff]   ;;  %v2557_v27 = vld [vmem:[%s3579_s0 + $0x58] sm:$0xff]  }
   0x9   :  { %2428 = vmatmul.mubr.msk.bf16.vlgmr.msra.gmra.mrb[0].mxu0 %vm387_vm2, %v2537_v7  ;;  %2480 = vmatmul.mubr.msk.bf16.vlgmr.msra.gmra.mrb[0].mxu1 %vm387_vm2, %v2538_v8  ;;  %v2558_v28 = vld [vmem:[%s3579_s0 + $0x128] sm:$0xff]   ;;  %v2559_v29 = vld [vmem:[%s3579_s0 + $0x60] sm:$0xff]   ;;  %v2560_v30 = vld [vmem:[%s3579_s0 + $0x130] sm:$0xff]  }
   0xa   :  { %2431 = vmatprep.mubr.msk.bf16.mxu0 %vm387_vm2, %v2539_v9  ;;  %2483 = vmatprep.mubr.msk.bf16.mxu1 %vm387_vm2, %v2540_v10  ;;  %v2561_v31 = vld [vmem:[%s3579_s0 + $0x68] sm:$0xff]   ;;  %v2562_v32 = vld [vmem:[%s3579_s0 + $0x138] sm:$0xff]   ;;  %v2563_v33 = vld [vmem:[%s3579_s0 + $0x70] sm:$0xff]  }
   0xb   :  { %v2564_v34 = vld [vmem:[%s3579_s0 + $0x140] sm:$0xff]   ;;  %v2565_v35 = vld [vmem:[%s3579_s0 + $0x78] sm:$0xff]   ;;  %v2566_v36 = vld [vmem:[%s3579_s0 + $0x148] sm:$0xff]  }
   0xc   :  { %v2567_v37 = vld [vmem:[%s3579_s0 + $0x80] sm:$0xff]   ;;  %v2568_v38 = vld [vmem:[%s3579_s0 + $0x150] sm:$0xff]   ;;  %v2569_v39 = vld [vmem:[%s3579_s0 + $0x88] sm:$0xff]  }
   0xd   :  { %v2570_v40 = vld [vmem:[%s3579_s0 + $0x158] sm:$0xff]   ;;  %v2571_v41 = vld [vmem:[%s3579_s0 + $0x90] sm:$0xff]   ;;  %v2572_v42 = vld [vmem:[%s3579_s0 + $0x160] sm:$0xff]  }
   0xe   :  { %v2573_v43 = vld [vmem:[%s3579_s0 + $0x98] sm:$0xff]   ;;  %v2574_v44 = vld [vmem:[%s3579_s0 + $0x168] sm:$0xff]   ;;  %v2575_v45 = vld [vmem:[%s3579_s0 + $0xa0] sm:$0xff]  }
   0xf   :  { %v2576_v46 = vld [vmem:[%s3579_s0 + $0x170] sm:$0xff]   ;;  %v2577_v47 = vld [vmem:[%s3579_s0 + $0xa8] sm:$0xff]   ;;  %v2578_v48 = vld [vmem:[%s3579_s0 + $0x178] sm:$0xff]  }
  0x10   :  { %v2579_v49 = vld [vmem:[%s3579_s0 + $0xb0] sm:$0xff]   ;;  %v2580_v50 = vld [vmem:[%s3579_s0 + $0x180] sm:$0xff]   ;;  %v2581_v51 = vld [vmem:[%s3579_s0 + $0xb8] sm:$0xff]  }
  0x11   :  { %2432 = vmatmul.mubr.msk.bf16.gmra.mrb[4].mxu0 %vm387_vm2, %v2541_v11  ;;  %2484 = vmatmul.mubr.msk.bf16.gmra.mrb[4].mxu1 %vm387_vm2, %v2542_v12  ;;  %v2582_v52 = vld [vmem:[%s3579_s0 + $0x188] sm:$0xff]   ;;  %v2583_v53 = vld [vmem:[%s3579_s0 + $0xc0] sm:$0xff]   ;;  %v2584_v54 = vld [vmem:[%s3579_s0 + $0x190] sm:$0xff]  }
  0x12   :  { %2435 = vmatprep.mubr.msk.bf16.mxu0 %vm387_vm2, %v2543_v13  ;;  %2487 = vmatprep.mubr.msk.bf16.mxu1 %vm387_vm2, %v2544_v14  ;;  %v2585_v55 = vld [vmem:[%s3579_s0 + $0xc8] sm:$0xff]   ;;  %v2586_v56 = vld [vmem:[%s3579_s0 + $0x198] sm:$0xff]  }
  0x19   :  { %2436 = vmatmul.mubr.msk.bf16.gmra.mrb[8].mxu0 %vm387_vm2, %v2545_v15  ;;  %2488 = vmatmul.mubr.msk.bf16.gmra.mrb[8].mxu1 %vm387_vm2, %v2546_v16 }
  0x1a   :  { %2439 = vmatprep.mubr.msk.bf16.mxu0 %vm387_vm2, %v2547_v17  ;;  %2491 = vmatprep.mubr.msk.bf16.mxu1 %vm387_vm2, %v2548_v18 }
  0x21   :  { %2440 = vmatmul.mubr.msk.bf16.gmra.mrb[12].mxu0 %vm387_vm2, %v2549_v19  ;;  %2492 = vmatmul.mubr.msk.bf16.gmra.mrb[12].mxu1 %vm387_vm2, %v2550_v20 }
  0x22   :  { %2443 = vmatprep.mubr.msk.bf16.mxu0 %vm387_vm2, %v2551_v21  ;;  %2495 = vmatprep.mubr.msk.bf16.mxu1 %vm387_vm2, %v2552_v22 }
  0x29   :  { %2444 = vmatmul.mubr.msk.bf16.gmra.mrb[16].mxu0 %vm387_vm2, %v2553_v23  ;;  %2496 = vmatmul.mubr.msk.bf16.gmra.mrb[16].mxu1 %vm387_vm2, %v2554_v24 }
  0x2a   :  { %2447 = vmatprep.mubr.msk.bf16.mxu0 %vm387_vm2, %v2555_v25  ;;  %2499 = vmatprep.mubr.msk.bf16.mxu1 %vm387_vm2, %v2556_v26  ;;  %v2836_v26 = vld [vmem:[%s3580_s2] ss:$0 sm:$0xff] }
  0x31   :  { %2448 = vmatmul.mubr.msk.bf16.gmra.mrb[20].mxu0 %vm387_vm2, %v2557_v27  ;;  %2500 = vmatmul.mubr.msk.bf16.gmra.mrb[20].mxu1 %vm387_vm2, %v2558_v28 }
  0x32   :  { %2451 = vmatprep.mubr.msk.bf16.mxu0 %vm387_vm2, %v2559_v29  ;;  %2503 = vmatprep.mubr.msk.bf16.mxu1 %vm387_vm2, %v2560_v30 }
  0x39   :  { %2452 = vmatmul.mubr.msk.bf16.gmra.mrb[24].mxu0 %vm387_vm2, %v2561_v31  ;;  %2504 = vmatmul.mubr.msk.bf16.gmra.mrb[24].mxu1 %vm387_vm2, %v2562_v32 }
  0x3a   :  { %2455 = vmatprep.mubr.msk.bf16.mxu0 %vm387_vm2, %v2563_v33  ;;  %2507 = vmatprep.mubr.msk.bf16.mxu1 %vm387_vm2, %v2564_v34 }
  0x41   :  { %2456 = vmatmul.mubr.msk.bf16.gmra.mrb[28].mxu0 %vm387_vm2, %v2565_v35  ;;  %2508 = vmatmul.mubr.msk.bf16.gmra.mrb[28].mxu1 %vm387_vm2, %v2566_v36 }
  0x42   :  { %2459 = vmatprep.mubr.msk.bf16.mxu0 %vm387_vm2, %v2567_v37  ;;  %2511 = vmatprep.mubr.msk.bf16.mxu1 %vm387_vm2, %v2568_v38 }
  0x49   :  { %2460 = vmatmul.mubr.msk.bf16.gmra.mrb[32].mxu0 %vm387_vm2, %v2569_v39  ;;  %2512 = vmatmul.mubr.msk.bf16.gmra.mrb[32].mxu1 %vm387_vm2, %v2570_v40 }
  0x4a   :  { %2463 = vmatprep.mubr.msk.bf16.mxu0 %vm387_vm2, %v2571_v41  ;;  %2515 = vmatprep.mubr.msk.bf16.mxu1 %vm387_vm2, %v2572_v42 }
  0x51   :  { %2464 = vmatmul.mubr.msk.bf16.gmra.mrb[36].mxu0 %vm387_vm2, %v2573_v43  ;;  %2516 = vmatmul.mubr.msk.bf16.gmra.mrb[36].mxu1 %vm387_vm2, %v2574_v44 }
  0x52   :  { %2467 = vmatprep.mubr.msk.bf16.mxu0 %vm387_vm2, %v2575_v45  ;;  %2519 = vmatprep.mubr.msk.bf16.mxu1 %vm387_vm2, %v2576_v46 }
  0x59   :  { %2468 = vmatmul.mubr.msk.bf16.gmra.mrb[40].mxu0 %vm387_vm2, %v2577_v47  ;;  %2520 = vmatmul.mubr.msk.bf16.gmra.mrb[40].mxu1 %vm387_vm2, %v2578_v48 }
  0x5a   :  { %2471 = vmatprep.mubr.msk.bf16.mxu0 %vm387_vm2, %v2579_v49  ;;  %2523 = vmatprep.mubr.msk.bf16.mxu1 %vm387_vm2, %v2580_v50 }
  0x61   :  { %2472 = vmatmul.mubr.msk.bf16.gmra.mrb[44].mxu0 %vm387_vm2, %v2581_v51  ;;  %2524 = vmatmul.mubr.msk.bf16.gmra.mrb[44].mxu1 %vm387_vm2, %v2582_v52 }
  0x62   :  { %2475 = vmatprep.mubr.msk.bf16.mxu0 %vm387_vm2, %v2583_v53  ;;  %2527 = vmatprep.mubr.msk.bf16.mxu1 %vm387_vm2, %v2584_v54 }
  0x69   :  { %2476 = vmatmul.mubr.msk.bf16.gmra.mrb[48].mxu0 %vm387_vm2, %v2585_v55  ;;  %2528 = vmatmul.mubr.msk.bf16.gmra.mrb[48].mxu1 %vm387_vm2, %v2586_v56 }
  0xdc   :  { %v2429_v57 = vpop.f32.mrb[0].mxu0  ;;  %v2821_v58 = vpop.f32.mrb[0].mxu1 }
  0xdd   :  { %v1015_v59 = vsel %vm1000_vm3, %v2429_v57, -inf  ;;  %v585_v60 = vpop.f32.mrb[1].mxu0  ;;  %v2824_v61 = vpop.f32.mrb[1].mxu1  ;;  %v2865_v53 = vsel %vm1000_vm3, %v2821_v58, -inf }
  0xde   :  { %v1016_v62 = vrot.slane %v1015_v59, 4  ;;  %v1001_v63 = vsel %vm1000_vm3, %v585_v60, -inf  ;;  %v2430_v0 = vpop.f32.mrb[2].mxu0  ;;  %v2827_v1 = vpop.f32.mrb[2].mxu1 }
  0xdf   :  { %v1002_v2 = vrot.slane %v1001_v63, 4  ;;  %v1022_v3 = vsel %vm1000_vm3, %v2430_v0, -inf  ;;  %v588_v4 = vpop.f32.mrb[3].mxu0  ;;  %v2830_v5 = vpop.f32.mrb[3].mxu1 }
  0xe0   :  { %v1017_v6 = vmax.f32 %v1015_v59, %v1016_v62  ;;  %v1023_v7 = vrot.slane %v1022_v3, 4  ;;  %v1008_v9 = vsel %vm1000_vm3, %v588_v4, -inf }
  0xe1   :  { %v1003_v8 = vmax.f32 %v1001_v63, %v1002_v2  ;;  %v1009_v13 = vrot.slane %v1008_v9, 4 }
  0xe2   :  { %v1018_v10 = vrot.slane %v1017_v6, 2  ;;  %v1024_v11 = vmax.f32 %v1022_v3, %v1023_v7 }
  0xe3   :  { %v1004_v12 = vrot.slane %v1003_v8, 2  ;;  %v1010_v19 = vmax.f32 %v1008_v9, %v1009_v13 }
  0xe4   :  { %v1019_v14 = vmax.f32 %v1017_v6, %v1018_v10  ;;  %v1025_v15 = vrot.slane %v1024_v11, 2  ;;  %v2433_v16 = vpop.f32.mrb[4].mxu0  ;;  %v2485_v17 = vpop.f32.mrb[4].mxu1 }
  0xe5   :  { %v1005_v18 = vmax.f32 %v1003_v8, %v1004_v12  ;;  %v601_v20 = vpop.f32.mrb[5].mxu0  ;;  %v809_v21 = vpop.f32.mrb[5].mxu1  ;;  %v1011_v28 = vrot.slane %v1010_v19, 2  ;;  %v1043_v50 = vsel %vm1000_vm3, %v2433_v16, -inf  ;;  %v1407_v56 = vsel %vm1000_vm3, %v2485_v17, -inf }
  0xe6   :  { %v1020_v22 = vrot.slane %v1019_v14, 1  ;;  %v1026_v23 = vmax.f32 %v1024_v11, %v1025_v15  ;;  %v2434_v24 = vpop.f32.mrb[6].mxu0  ;;  %v2486_v25 = vpop.f32.mrb[6].mxu1  ;;  %v1044_v55 = vrot.slane %v1043_v50, 4  ;;  %v1408_v60 = vrot.slane %v1407_v56, 4 }
  0xe7   :  { %v1006_v27 = vrot.slane %v1005_v18, 1  ;;  %v2838_v29 = vpop.f32.mrb[7].mxu0  ;;  %v2840_v30 = vpop.f32.mrb[7].mxu1  ;;  %v1012_v34 = vmax.f32 %v1010_v19, %v1011_v28  ;;  %v1029_v62 = vsel %vm1000_vm3, %v601_v20, -inf  ;;  %v1393_v2 = vsel %vm1000_vm3, %v809_v21, -inf }
  0xe8   :  { %v1021_v31 = vmax.f32 %v1019_v14, %v1020_v22  ;;  %v1027_v32 = vrot.slane %v1026_v23, 1  ;;  %v1045_v63 = vmax.f32 %v1043_v50, %v1044_v55  ;;  %v1030_v0 = vrot.slane %v1029_v62, 4 }
  0xe9   :  { %v1007_v33 = vmax.f32 %v1005_v18, %v1006_v27  ;;  %v1013_v37 = vrot.slane %v1012_v34, 1  ;;  %v1050_v3 = vsel %vm1000_vm3, %v2434_v24, -inf  ;;  %v1409_v7 = vmax.f32 %v1407_v56, %v1408_v60 }
  0xea   :  { %v1737_v35 = vadd.f32 %v2836_v26, %v1021_v31  ;;  %v1028_v36 = vmax.f32 %v1026_v23, %v1027_v32  ;;  %v1394_v58 = vrot.slane %v1393_v2, 4  ;;  %v1046_v8 = vrot.slane %v1045_v63, 2 }
  0xeb   :  { %v1735_v38 = vadd.f32 %v2836_v26, %v1007_v33  ;;  %v1014_v43 = vmax.f32 %v1012_v34, %v1013_v37  ;;  %v1031_v9 = vmax.f32 %v1029_v62, %v1030_v0  ;;  %v1051_v10 = vrot.slane %v1050_v3, 4 }
  0xec   :  { %v1738_v39 = vadd.f32 %v2836_v26, %v1028_v36  ;;  %v2845_v40 = vpop.f32.mrb[8].mxu0  ;;  %v2847_v41 = vpop.f32.mrb[8].mxu1  ;;  %v1841_v42 = vmax.f32 %v1737_v35, 0.0  ;;  %v1414_v11 = vsel %vm1000_vm3, %v2486_v25, -inf  ;;  %v1410_v15 = vrot.slane %v1409_v7, 2 }
  0xed   :  { %v2849_v44 = vpop.f32.mrb[9].mxu0  ;;  %v2851_v45 = vpop.f32.mrb[9].mxu1  ;;  %v1736_v49 = vadd.f32 %v2836_v26, %v1014_v43  ;;  %v1839_v54 = vmax.f32 %v1735_v38, 0.0  ;;  %v1395_v16 = vmax.f32 %v1393_v2, %v1394_v58  ;;  %v1415_v17 = vrot.slane %v1414_v11, 4 }
  0xee   :  { %v2853_v46 = vpop.f32.mrb[10].mxu0  ;;  %v2855_v47 = vpop.f32.mrb[10].mxu1  ;;  %v1842_v48 = vmax.f32 %v1738_v39, 0.0  ;;  %v2050_v57 = vrot.slane %v1841_v42, 6  ;;  %v1047_v21 = vmax.f32 %v1045_v63, %v1046_v8  ;;  %v1032_v22 = vrot.slane %v1031_v9, 2 }
  0xef   :  { %v2859_v51 = vpop.f32.mrb[11].mxu0  ;;  %v2861_v52 = vpop.f32.mrb[11].mxu1  ;;  %v1840_v59 = vmax.f32 %v1736_v49, 0.0  ;;  %v1052_v23 = vmax.f32 %v1050_v3, %v1051_v10  ;;  %v1411_v27 = vmax.f32 %v1409_v7, %v1410_v15  ;;  %v1396_v31 = vrot.slane %v1395_v16, 2 }
  0xf0   :  { %v2053_v4 = vrot.slane %v1842_v48, 5  ;;  %v1416_v32 = vmax.f32 %v1414_v11, %v1415_v17  ;;  %v1048_v35 = vrot.slane %v1047_v21, 1  ;;  %v1033_v36 = vmax.f32 %v1031_v9, %v1032_v22 }
  0xf1   :  { %v2047_v6 = vrot.slane %v1840_v59, 7  ;;  %v1053_v37 = vrot.slane %v1052_v23, 2  ;;  %v1036_v38 = vsel %vm1000_vm3, %v2838_v29, -inf  ;;  %v1412_v39 = vrot.slane %v1411_v27, 1 }
  0xf2   :  { %v1397_v42 = vmax.f32 %v1395_v16, %v1396_v31  ;;  %v1417_v43 = vrot.slane %v1416_v32, 2  ;;  %v1037_v48 = vrot.slane %v1036_v38, 4  ;;  %v1049_v49 = vmax.f32 %v1047_v21, %v1048_v35 }
  0xf3   :  { %v2049_v14 = vsel %vm2048_vm4, %v2047_v6, %v1839_v54  ;;  %v1034_v50 = vrot.slane %v1033_v36, 1  ;;  %v1054_v54 = vmax.f32 %v1052_v23, %v1053_v37  ;;  %v1400_v55 = vsel %vm1000_vm3, %v2840_v30, -inf }
  0xf4   :  { %v2872_v12 = vpop.f32.mrb[12].mxu0  ;;  %v2874_v13 = vpop.f32.mrb[12].mxu1  ;;  %v2052_v20 = vsel %vm2051_vm5, %v2050_v57, %v2049_v14  ;;  %v1413_v56 = vmax.f32 %v1411_v27, %v1412_v39  ;;  %v1398_v57 = vrot.slane %v1397_v42, 1  ;;  %v1418_v59 = vmax.f32 %v1416_v32, %v1417_v43 }
  0xf5   :  { %v2877_v18 = vpop.f32.mrb[13].mxu0  ;;  %v2879_v19 = vpop.f32.mrb[13].mxu1  ;;  %v2887_v28 = vsel %vm2054_vm6, %v2053_v4, %v2052_v20  ;;  %v1038_v60 = vmax.f32 %v1036_v38, %v1037_v48  ;;  %v1741_v62 = vadd.f32 %v2836_v26, %v1049_v49  ;;  %v1035_v63 = vmax.f32 %v1033_v36, %v1034_v50 }
  0xf6   :  { %v2882_v24 = vpop.f32.mrb[14].mxu0  ;;  %v2884_v25 = vpop.f32.mrb[14].mxu1  ;;  %v1055_v0 = vrot.slane %v1054_v54, 1  ;;  %v1401_v2 = vrot.slane %v1400_v55, 4  ;;  %v1793_v4 = vadd.f32 %v2836_v26, %v1413_v56  ;;  %v1399_v6 = vmax.f32 %v1397_v42, %v1398_v57 }
  0xf7   :  { %v2889_v33 = vpop.f32.mrb[15].mxu0  ;;  %v2891_v34 = vpop.f32.mrb[15].mxu1  ;;  %v1419_v7 = vrot.slane %v1418_v59, 1  ;;  %v1039_v58 = vrot.slane %v1038_v60, 2  ;;  %v1845_v9 = vmax.f32 %v1741_v62, 0.0  ;;  %v1739_v10 = vadd.f32 %v2836_v26, %v1035_v63 }
  0xf8   :  { %v1056_v11 = vmax.f32 %v1054_v54, %v1055_v0  ;;  %v1402_v14 = vmax.f32 %v1400_v55, %v1401_v2  ;;  %v1897_v17 = vmax.f32 %v1793_v4, 0.0  ;;  %v2919_v35 = vsel %vm1000_vm3, %v2824_v61, -inf }
  0xf9   :  { %v1040_v20 = vmax.f32 %v1038_v60, %v1039_v58  ;;  %v1843_v27 = vmax.f32 %v1739_v10, 0.0  ;;  %v1420_v31 = vmax.f32 %v1418_v59, %v1419_v7  ;;  %v2922_v36 = vadd.f32 %v2836_v26, %v1399_v6 }
  0xfa   :  { %v1403_v32 = vrot.slane %v1402_v14, 2  ;;  %v1742_v37 = vadd.f32 %v2836_v26, %v1056_v11  ;;  %v2062_v39 = vrot.slane %v1845_v9, 2  ;;  %v1071_v48 = vsel %vm1000_vm3, %v2845_v40, -inf }
  0xfb   :  { %v1041_v38 = vrot.slane %v1040_v20, 1  ;;  %v2056_v42 = vrot.slane %v1843_v27, 4  ;;  %v2927_v49 = vrot.slane %v1897_v17, 6  ;;  %v1072_v54 = vrot.slane %v1071_v48, 4 }
  0xfc   :  { %v2898_v29 = vpop.f32.mrb[16].mxu0  ;;  %v2900_v3 = vpop.f32.mrb[16].mxu1  ;;  %v1404_v43 = vmax.f32 %v1402_v14, %v1403_v32  ;;  %v1435_v61 = vsel %vm1000_vm3, %v2847_v41, -inf  ;;  %v1794_v56 = vadd.f32 %v2836_v26, %v1420_v31  ;;  %v1846_v63 = vmax.f32 %v1742_v37, 0.0 }
  0xfd   :  { %v2903_v8 = vpop.f32.mrb[17].mxu0  ;;  %v2905_v30 = vpop.f32.mrb[17].mxu1  ;;  %v1042_v50 = vmax.f32 %v1040_v20, %v1041_v38  ;;  %v2058_v55 = vsel %vm2057_vm7, %v2056_v42, %v2887_v28  ;;  %v1436_v59 = vrot.slane %v1435_v61, 4  ;;  %v1073_v0 = vmax.f32 %v1071_v48, %v1072_v54 }
  0xfe   :  { %v2908_v15 = vpop.f32.mrb[18].mxu0  ;;  %v2910_v16 = vpop.f32.mrb[18].mxu1  ;;  %v1405_v57 = vrot.slane %v1404_v43, 1  ;;  %v1057_v2 = vsel %vm1000_vm3, %v2849_v44, -inf  ;;  %v1421_v58 = vsel %vm1000_vm3, %v2851_v45, -inf  ;;  %v1078_v44 = vsel %vm1000_vm3, %v2853_v46, -inf }
  0xff   :  { %v2912_v21 = vpop.f32.mrb[19].mxu0  ;;  %v2914_v22 = vpop.f32.mrb[19].mxu1  ;;  %v1740_v40 = vadd.f32 %v2836_v26, %v1042_v50  ;;  %v1437_v6 = vmax.f32 %v1435_v61, %v1436_v59  ;;  %v1058_v7 = vrot.slane %v1057_v2, 4  ;;  %v1074_v14 = vrot.slane %v1073_v0, 2 }
 0x100   :  { %v1406_v28 = vmax.f32 %v1404_v43, %v1405_v57  ;;  %v1422_v17 = vrot.slane %v1421_v58, 4  ;;  %v1079_v38 = vrot.slane %v1078_v44, 4  ;;  %v1442_v48 = vsel %vm1000_vm3, %v2855_v47, -inf }
 0x101   :  { %v1844_v11 = vmax.f32 %v1740_v40, 0.0  ;;  %v1438_v32 = vrot.slane %v1437_v6, 2  ;;  %v1059_v37 = vmax.f32 %v1057_v2, %v1058_v7  ;;  %v1075_v42 = vmax.f32 %v1073_v0, %v1074_v14 }
 0x102   :  { %v1792_v31 = vadd.f32 %v2836_v26, %v1406_v28  ;;  %v1423_v43 = vmax.f32 %v1421_v58, %v1422_v17  ;;  %v2065_v50 = vrot.slane %v1846_v63, 1  ;;  %v1898_v54 = vmax.f32 %v1794_v56, 0.0 }
 0x103   :  { %v2059_v45 = vrot.slane %v1844_v11, 3  ;;  %v1080_v57 = vmax.f32 %v1078_v44, %v1079_v38  ;;  %v1439_v59 = vmax.f32 %v1437_v6, %v1438_v32  ;;  %v1443_v23 = vrot.slane %v1442_v48, 4 }
 0x104   :  { %v2934_v60 = vpop.f32.mrb[20].mxu0  ;;  %v2936_v62 = vpop.f32.mrb[20].mxu1  ;;  %v1896_v61 = vmax.f32 %v1792_v31, 0.0  ;;  %v1424_v40 = vrot.slane %v1423_v43, 2  ;;  %v1895_v28 = vmax.f32 %v2922_v36, 0.0  ;;  %v1060_v11 = vrot.slane %v1059_v37, 2 }
 0x105   :  { %v2941_v4 = vpop.f32.mrb[21].mxu0  ;;  %v2943_v41 = vpop.f32.mrb[21].mxu1  ;;  %v2061_v46 = vsel %vm2060_vm8, %v2059_v45, %v2058_v55  ;;  %v1076_v56 = vrot.slane %v1075_v42, 1  ;;  %v1081_v14 = vrot.slane %v1080_v57, 2  ;;  %v1366_v6 = vrot.slane %v2919_v35, 4 }
 0x106   :  { %v2947_v9 = vpop.f32.mrb[22].mxu0  ;;  %v2949_v10 = vpop.f32.mrb[22].mxu1  ;;  %v2064_v2 = vsel %vm2063_vm9, %v2062_v39, %v2061_v46  ;;  %v2152_v7 = vrot.slane %v1896_v61, 7  ;;  %v1425_v63 = vmax.f32 %v1423_v43, %v1424_v40  ;;  %v2156_v36 = vrot.slane %v1898_v54, 5 }
 0x107   :  { %v2953_v20 = vpop.f32.mrb[23].mxu0  ;;  %v2955_v27 = vpop.f32.mrb[23].mxu1  ;;  %v2067_v47 = vsel %vm2066_vm10, %v2065_v50, %v2064_v2  ;;  %v1444_v44 = vmax.f32 %v1442_v48, %v1443_v23  ;;  %v2984_v38 = vsel %vm1000_vm3, %v2827_v1, -inf  ;;  %v1440_v43 = vrot.slane %v1439_v59, 1 }
 0x108   :  { %2249 = vst.msk [vmem:[%s3581_s3] sm:$0xff] %vm1000_vm3, %v2067_v47  ;;  %v2153_v39 = vsel %vm2048_vm4, %v2152_v7, %v1895_v28  ;;  %v1426_v50 = vrot.slane %v1425_v63, 1  ;;  %v1061_v46 = vmax.f32 %v1059_v37, %v1060_v11  ;;  %v1082_v48 = vmax.f32 %v1080_v57, %v1081_v14 }
 0x109   :  { %v2155_v45 = vsel %vm2051_vm5, %v2927_v49, %v2153_v39  ;;  %v1445_v40 = vrot.slane %v1444_v44, 2  ;;  %v1077_v28 = vmax.f32 %v1075_v42, %v1076_v56  ;;  %v1064_v1 = vsel %vm1000_vm3, %v2859_v51, -inf }
 0x10a   :  { %v2157_v23 = vsel %vm2054_vm6, %v2156_v36, %v2155_v45  ;;  %v1427_v2 = vmax.f32 %v1425_v63, %v1426_v50  ;;  %v3586_v7 = vrot.slane %v2865_v53, 4  ;;  %v1065_v39 = vrot.slane %v1064_v1, 4 }
 0x10b   :  { %v1446_v47 = vmax.f32 %v1444_v44, %v1445_v40  ;;  %v1428_v42 = vsel %vm1000_vm3, %v2861_v52, -inf  ;;  %v1441_v11 = vmax.f32 %v1439_v59, %v1440_v43  ;;  %v1062_v56 = vrot.slane %v1061_v46, 1 }
 0x10c   :  { %v2963_v0 = vpop.f32.mrb[24].mxu0  ;;  %v2965_v58 = vpop.f32.mrb[24].mxu1  ;;  %v2998_v49 = vmax.f32 %v2865_v53, %v3586_v7  ;;  %v1795_v57 = vadd.f32 %v2836_v26, %v1427_v2  ;;  %v1083_v51 = vrot.slane %v1082_v48, 1  ;;  %v1066_v63 = vmax.f32 %v1064_v1, %v1065_v39 }
 0x10d   :  { %v2968_v17 = vpop.f32.mrb[25].mxu0  ;;  %v2970_v55 = vpop.f32.mrb[25].mxu1  ;;  %v3012_v36 = vadd.f32 %v2836_v26, %v1077_v28  ;;  %v1099_v44 = vsel %vm1000_vm3, %v2872_v12, -inf  ;;  %v1447_v52 = vrot.slane %v1446_v47, 1  ;;  %v1463_v40 = vsel %vm1000_vm3, %v2874_v13, -inf }
 0x10e   :  { %v2978_v31 = vpop.f32.mrb[26].mxu0  ;;  %v2980_v32 = vpop.f32.mrb[26].mxu1  ;;  %v1067_v59 = vrot.slane %v1066_v63, 2  ;;  %v1100_v43 = vrot.slane %v1099_v44, 4  ;;  %v3028_v28 = vsel %vm1000_vm3, %v2830_v5, -inf  ;;  %v1464_v39 = vrot.slane %v1463_v40, 4 }
 0x10f   :  { %3583 = vst [vmem:[#allocation2_spill] sm:$0xff] %v2980_v32  ;;  %v2988_v54 = vpop.f32.mrb[27].mxu0  ;;  %v2990_v61 = vpop.f32.mrb[27].mxu1  ;;  %v1085_v13 = vsel %vm1000_vm3, %v2877_v18, -inf  ;;  %v1106_v18 = vsel %vm1000_vm3, %v2882_v24, -inf }
 0x110   :  { %3584 = vst [vmem:[#allocation3_spill] sm:$0xff] %v2988_v54  ;;  %3585 = vst [vmem:[#allocation4_spill] sm:$0xff] %v2990_v61  ;;  %v3001_v54 = vmax.f32 %v2919_v35, %v1366_v6  ;;  %v1899_v35 = vmax.f32 %v1795_v57, 0.0  ;;  %v1429_v6 = vrot.slane %v1428_v42, 4 }
 0x112   :  { %v2158_v7 = vrot.slane %v1899_v35, 4  ;;  %v1430_v12 = vmax.f32 %v1428_v42, %v1429_v6  ;;  %v1101_v35 = vmax.f32 %v1099_v44, %v1100_v43  ;;  %v1849_v42 = vmax.f32 %v3012_v36, 0.0 }
 0x113   :  { %v1448_v6 = vmax.f32 %v1446_v47, %v1447_v52 }
 0x114   :  { %v3007_v14 = vpop.f32.mrb[28].mxu0  ;;  %v3009_v53 = vpop.f32.mrb[28].mxu1  ;;  %v1431_v5 = vrot.slane %v1430_v12, 2  ;;  %v1102_v44 = vrot.slane %v1101_v35, 2 }
 0x115   :  { %3587 = vst [vmem:[#allocation5_spill] sm:$0xff] %v3007_v14  ;;  %3588 = vst [vmem:[#allocation6_spill] sm:$0xff] %v3009_v53  ;;  %v3016_v45 = vpop.f32.mrb[29].mxu0  ;;  %v3018_v50 = vpop.f32.mrb[29].mxu1  ;;  %v1068_v53 = vmax.f32 %v1066_v63, %v1067_v59  ;;  %v1086_v14 = vrot.slane %v1085_v13, 4  ;;  %v1107_v59 = vrot.slane %v1106_v18, 4 }
 0x116   :  { %3589 = vst [vmem:[#allocation7_spill] sm:$0xff] %v3016_v45  ;;  %3590 = vst [vmem:[#allocation8_spill] sm:$0xff] %v3018_v50  ;;  %v3022_v2 = vpop.f32.mrb[30].mxu0  ;;  %v3024_v1 = vpop.f32.mrb[30].mxu1  ;;  %v1063_v50 = vmax.f32 %v1061_v46, %v1062_v56  ;;  %v1084_v45 = vmax.f32 %v1082_v48, %v1083_v51  ;;  %v1465_v46 = vmax.f32 %v1463_v40, %v1464_v39  ;;  %v1449_v48 = vsel %vm1000_vm3, %v2879_v19, -inf }
 0x117   :  { %3591 = vst [vmem:[#allocation9_spill] sm:$0xff] %v3022_v2  ;;  %3592 = vst [vmem:[#allocation10_spill] sm:$0xff] %v3024_v1  ;;  %v3030_v57 = vpop.f32.mrb[31].mxu0  ;;  %v3032_v37 = vpop.f32.mrb[31].mxu1  ;;  %v3037_v2 = vadd.f32 %v2836_v26, %v1441_v11  ;;  %v3040_v1 = vsel %vm2057_vm7, %v2158_v7, %v2157_v23  ;;  %v1087_v51 = vmax.f32 %v1085_v13, %v1086_v14  ;;  %v1450_v52 = vrot.slane %v1449_v48, 4 }
 0x118   :  { %3593 = vst [vmem:[#allocation11_spill] sm:$0xff] %v3030_v57  ;;  %3594 = vst [vmem:[#allocation12_spill] sm:$0xff] %v3032_v37  ;;  %v1069_v57 = vrot.slane %v1068_v53, 1  ;;  %v1432_v37 = vmax.f32 %v1430_v12, %v1431_v5  ;;  %v1743_v11 = vadd.f32 %v2836_v26, %v1063_v50  ;;  %v1746_v23 = vadd.f32 %v2836_v26, %v1084_v45 }
 0x119   :  { %v1901_v24 = vmax.f32 %v3037_v2, 0.0  ;;  %v1088_v40 = vrot.slane %v1087_v51, 2  ;;  %v1470_v14 = vsel %vm1000_vm3, %v2884_v25, -inf  ;;  %v1798_v7 = vadd.f32 %v2836_v26, %v1448_v6 }
 0x11a   :  { %v1070_v56 = vmax.f32 %v1068_v53, %v1069_v57  ;;  %v1433_v47 = vrot.slane %v1432_v37, 1  ;;  %v1466_v39 = vrot.slane %v1465_v46, 2  ;;  %v1108_v57 = vmax.f32 %v1106_v18, %v1107_v59 }
 0x11b   :  { %v1850_v2 = vmax.f32 %v1746_v23, 0.0 }
 0x11c   :  { %v3049_v63 = vpop.f32.mrb[32].mxu0  ;;  %v3051_v36 = vpop.f32.mrb[32].mxu1  ;;  %v1744_v50 = vadd.f32 %v2836_v26, %v1070_v56  ;;  %v1434_v12 = vmax.f32 %v1432_v37, %v1433_v47  ;;  %v1089_v56 = vmax.f32 %v1087_v51, %v1088_v40  ;;  %v1109_v32 = vrot.slane %v1108_v57, 2 }
 0x11d   :  { %3595 = vst [vmem:[#allocation13_spill] sm:$0xff] %v3049_v63  ;;  %3596 = vst [vmem:[#allocation14_spill] sm:$0xff] %v3051_v36  ;;  %v3053_v43 = vpop.f32.mrb[33].mxu0  ;;  %v3055_v19 = vpop.f32.mrb[33].mxu1  ;;  %v1847_v36 = vmax.f32 %v1743_v11, 0.0  ;;  %v1103_v63 = vmax.f32 %v1101_v35, %v1102_v44  ;;  %v2070_v37 = vrot.slane %v1849_v42, 6  ;;  %v1467_v59 = vmax.f32 %v1465_v46, %v1466_v39 }
 0x11e   :  { %3597 = vst [vmem:[#allocation15_spill] sm:$0xff] %v3053_v43  ;;  %3598 = vst [vmem:[#allocation16_spill] sm:$0xff] %v3055_v19  ;;  %v3061_v53 = vpop.f32.mrb[34].mxu0  ;;  %v3063_v45 = vpop.f32.mrb[34].mxu1  ;;  %v1848_v19 = vmax.f32 %v1744_v50, 0.0  ;;  %v1471_v43 = vrot.slane %v1470_v14, 4  ;;  %v1796_v25 = vadd.f32 %v2836_v26, %v1434_v12 }
 0x11f   :  { %3599 = vst [vmem:[#allocation17_spill] sm:$0xff] %v3061_v53  ;;  %3600 = vst [vmem:[#allocation18_spill] sm:$0xff] %v3063_v45  ;;  %v3066_v13 = vpop.f32.mrb[35].mxu0  ;;  %v3068_v5 = vpop.f32.mrb[35].mxu1  ;;  %v1451_v53 = vmax.f32 %v1449_v48, %v1450_v52  ;;  %v1090_v45 = vrot.slane %v1089_v56, 1  ;;  %v1902_v47 = vmax.f32 %v1798_v7, 0.0 }
 0x120   :  { %3601 = vst [vmem:[#allocation19_spill] sm:$0xff] %v3066_v13  ;;  %3602 = vst [vmem:[#allocation20_spill] sm:$0xff] %v3068_v5  ;;  %v2068_v61 = vrot.slane %v1848_v19, 7  ;;  %v1472_v6 = vmax.f32 %v1470_v14, %v1471_v43  ;;  %v1900_v18 = vmax.f32 %v1796_v25, 0.0  ;;  %v2072_v13 = vrot.slane %v1850_v2, 5 }
 0x121   :  { %v1091_v23 = vmax.f32 %v1089_v56, %v1090_v45  ;;  %v1104_v44 = vrot.slane %v1103_v63, 1  ;;  %v1452_v52 = vrot.slane %v1451_v53, 2  ;;  %v2162_v43 = vrot.slane %v1901_v24, 2 }
 0x122   :  { %v2069_v5 = vsel %vm2048_vm4, %v2068_v61, %v1847_v36  ;;  %v1473_v50 = vrot.slane %v1472_v6, 2  ;;  %v2160_v48 = vrot.slane %v1900_v18, 3  ;;  %v1110_v36 = vmax.f32 %v1108_v57, %v1109_v32 }
 0x123   :  { %v2071_v35 = vsel %vm2051_vm5, %v2070_v37, %v2069_v5  ;;  %v1747_v46 = vadd.f32 %v2836_v26, %v1091_v23  ;;  %v2164_v7 = vrot.slane %v1902_v47, 1  ;;  %v1468_v39 = vrot.slane %v1467_v59, 1 }
 0x124   :  { %v3072_v51 = vpop.f32.mrb[36].mxu0  ;;  %v3074_v11 = vpop.f32.mrb[36].mxu1  ;;  %v2073_v61 = vsel %vm2054_vm6, %v2072_v13, %v2071_v35  ;;  %v2161_v12 = vsel %vm2060_vm8, %v2160_v48, %v3040_v1  ;;  %v1474_v56 = vmax.f32 %v1472_v6, %v1473_v50  ;;  %v1092_v32 = vsel %vm1000_vm3, %v2889_v33, -inf }
 0x125   :  { %v3077_v19 = vpop.f32.mrb[37].mxu0  ;;  %v3079_v42 = vpop.f32.mrb[37].mxu1  ;;  %v2163_v24 = vsel %vm2063_vm9, %v2162_v43, %v2161_v12  ;;  %v1851_v2 = vmax.f32 %v1747_v46, 0.0  ;;  %v1105_v13 = vmax.f32 %v1103_v63, %v1104_v44  ;;  %v1453_v25 = vmax.f32 %v1451_v53, %v1452_v52 }
 0x126   :  { %v3083_v40 = vpop.f32.mrb[38].mxu0  ;;  %v3085_v14 = vpop.f32.mrb[38].mxu1  ;;  %v2165_v57 = vsel %vm2066_vm10, %v2164_v7, %v2163_v24  ;;  %v1093_v37 = vrot.slane %v1092_v32, 4  ;;  %v1111_v47 = vrot.slane %v1110_v36, 1  ;;  %v1456_v18 = vsel %vm1000_vm3, %v2891_v34, -inf }
 0x127   :  { %v3090_v5 = vpop.f32.mrb[39].mxu0  ;;  %2256 = vst.msk [vmem:[%s3581_s3 + $0x38] sm:$0xff] %vm1000_vm3, %v2165_v57  ;;  %v2074_v1 = vrot.slane %v1851_v2, 4  ;;  %v1127_v6 = vsel %vm1000_vm3, %v2898_v29, -inf  ;;  %v3603_v33 = vrot.slane %v2984_v38, 4  ;;  %v1469_v63 = vmax.f32 %v1467_v59, %v1468_v39  ;;  %v3109_v35 = vpop.f32.mrb[39].mxu1 }
 0x128   :  { %v1094_v53 = vmax.f32 %v1092_v32, %v1093_v37  ;;  %v1457_v50 = vrot.slane %v1456_v18, 4  ;;  %v1475_v44 = vrot.slane %v1474_v56, 1  ;;  %v1128_v52 = vrot.slane %v1127_v6, 4 }
 0x129   :  { %v3107_v23 = vmax.f32 %v2984_v38, %v3603_v33  ;;  %v3112_v48 = vsel %vm2057_vm7, %v2074_v1, %v2073_v61  ;;  %v1491_v34 = vsel %vm1000_vm3, %v2900_v3, -inf  ;;  %v1454_v43 = vrot.slane %v1453_v25, 1 }
 0x12a   :  { %v1095_v29 = vrot.slane %v1094_v53, 2  ;;  %v1458_v46 = vmax.f32 %v1456_v18, %v1457_v50  ;;  %v1492_v7 = vrot.slane %v1491_v34, 4  ;;  %v1749_v38 = vadd.f32 %v2836_v26, %v1105_v13 }
 0x12b   :  { %3604 = vst [vmem:[#allocation21_spill] sm:$0xff] %v3107_v23  ;;  %v1112_v12 = vmax.f32 %v1110_v36, %v1111_v47  ;;  %v1129_v59 = vmax.f32 %v1127_v6, %v1128_v52  ;;  %v1477_v39 = vsel %vm1000_vm3, %v2905_v30, -inf  ;;  %v1113_v32 = vsel %vm1000_vm3, %v2903_v8, -inf }
 0x12c   :  { %v1096_v24 = vmax.f32 %v1094_v53, %v1095_v29  ;;  %v1459_v2 = vrot.slane %v1458_v46, 2  ;;  %v1493_v61 = vmax.f32 %v1491_v34, %v1492_v7  ;;  %v1801_v57 = vadd.f32 %v2836_v26, %v1469_v63  ;;  %v3124_v18 = vpop.f32.mrb[40].mxu0  ;;  %v3126_v36 = vpop.f32.mrb[40].mxu1 }
 0x12d   :  { %v1476_v3 = vmax.f32 %v1474_v56, %v1475_v44  ;;  %v1478_v37 = vrot.slane %v1477_v39, 4  ;;  %v1134_v1 = vsel %vm1000_vm3, %v2908_v15, -inf  ;;  %3605 = vst [vmem:[#allocation22_spill] sm:$0xff] %v3124_v18  ;;  %3606 = vst [vmem:[#allocation23_spill] sm:$0xff] %v3126_v36  ;;  %v1455_v13 = vmax.f32 %v1453_v25, %v1454_v43  ;;  %v3128_v33 = vpop.f32.mrb[41].mxu0  ;;  %v3130_v53 = vpop.f32.mrb[41].mxu1 }
 0x12e   :  { %v1097_v47 = vrot.slane %v1096_v24, 1  ;;  %v1460_v30 = vmax.f32 %v1458_v46, %v1459_v2  ;;  %v1130_v6 = vrot.slane %v1129_v59, 2  ;;  %3607 = vst [vmem:[#allocation24_spill] sm:$0xff] %v3128_v33  ;;  %3608 = vst [vmem:[#allocation25_spill] sm:$0xff] %v3130_v53  ;;  %v1750_v8 = vadd.f32 %v2836_v26, %v1112_v12  ;;  %v3133_v44 = vpop.f32.mrb[42].mxu0  ;;  %v3135_v15 = vpop.f32.mrb[42].mxu1 }
 0x12f   :  { %v1114_v63 = vrot.slane %v1113_v32, 4  ;;  %v1479_v56 = vmax.f32 %v1477_v39, %v1478_v37  ;;  %v1135_v50 = vrot.slane %v1134_v1, 4  ;;  %3609 = vst [vmem:[#allocation26_spill] sm:$0xff] %v3133_v44  ;;  %3610 = vst [vmem:[#allocation27_spill] sm:$0xff] %v3135_v15  ;;  %v1494_v29 = vrot.slane %v1493_v61, 2  ;;  %v3139_v43 = vpop.f32.mrb[43].mxu0 }
 0x130   :  { %v1098_v52 = vmax.f32 %v1096_v24, %v1097_v47  ;;  %v1461_v34 = vrot.slane %v1460_v30, 1  ;;  %v1498_v25 = vsel %vm1000_vm3, %v2910_v16, -inf  ;;  %3611 = vst [vmem:[#allocation28_spill] sm:$0xff] %v3139_v43  ;;  %v1853_v46 = vmax.f32 %v1749_v38, 0.0 }
 0x131   :  { %v1802_v7 = vadd.f32 %v2836_v26, %v1476_v3  ;;  %v1480_v2 = vrot.slane %v1479_v56, 2  ;;  %v1136_v12 = vmax.f32 %v1134_v1, %v1135_v50  ;;  %v1131_v45 = vmax.f32 %v1129_v59, %v1130_v6 }
 0x132   :  { %v1748_v39 = vadd.f32 %v2836_v26, %v1098_v52  ;;  %v1462_v37 = vmax.f32 %v1460_v30, %v1461_v34  ;;  %v1499_v23 = vrot.slane %v1498_v25, 4  ;;  %v1799_v15 = vadd.f32 %v2836_v26, %v1455_v13 }
 0x133   :  { %v1854_v24 = vmax.f32 %v1750_v8, 0.0  ;;  %v1115_v47 = vmax.f32 %v1113_v32, %v1114_v63  ;;  %v1481_v44 = vmax.f32 %v1479_v56, %v1480_v2  ;;  %v1495_v53 = vmax.f32 %v1493_v61, %v1494_v29 }
 0x134   :  { %v1852_v33 = vmax.f32 %v1748_v39, 0.0  ;;  %v1800_v16 = vadd.f32 %v2836_v26, %v1462_v37  ;;  %v1500_v43 = vmax.f32 %v1498_v25, %v1499_v23  ;;  %v2078_v38 = vrot.slane %v1853_v46, 2 }
 0x135   :  { %v1905_v36 = vmax.f32 %v1801_v57, 0.0  ;;  %v1482_v3 = vrot.slane %v1481_v44, 1  ;;  %v1137_v18 = vrot.slane %v1136_v12, 2  ;;  %v1906_v1 = vmax.f32 %v1802_v7, 0.0 }
 0x136   :  { %v2076_v50 = vrot.slane %v1852_v33, 3  ;;  %v1904_v52 = vmax.f32 %v1800_v16, 0.0  ;;  %v1132_v30 = vrot.slane %v1131_v45, 1  ;;  %v1903_v59 = vmax.f32 %v1799_v15, 0.0 }
 0x137   :  { %v1116_v6 = vrot.slane %v1115_v47, 2  ;;  %v1483_v34 = vmax.f32 %v1481_v44, %v1482_v3  ;;  %v1501_v13 = vrot.slane %v1500_v43, 2  ;;  %v2080_v8 = vrot.slane %v1854_v24, 1 }
 0x138   :  { %v2077_v32 = vsel %vm2060_vm8, %v2076_v50, %v3112_v48  ;;  %v2166_v63 = vrot.slane %v1904_v52, 7  ;;  %v1496_v56 = vrot.slane %v1495_v53, 1  ;;  %v2168_v61 = vrot.slane %v1905_v36, 6 }
 0x139   :  { %v2079_v23 = vsel %vm2063_vm9, %v2078_v38, %v2077_v32  ;;  %v1803_v57 = vadd.f32 %v2836_v26, %v1483_v34  ;;  %v1138_v29 = vmax.f32 %v1136_v12, %v1137_v18  ;;  %v2170_v25 = vrot.slane %v1906_v1, 5  ;;  %v3161_v38 = vpop.f32.mrb[43].mxu1 }
 0x13a   :  { %v2081_v33 = vsel %vm2066_vm10, %v2080_v8, %v2079_v23  ;;  %v2167_v15 = vsel %vm2048_vm4, %v2166_v63, %v1903_v59  ;;  %v1133_v46 = vmax.f32 %v1131_v45, %v1132_v30  ;;  %v1117_v44 = vmax.f32 %v1115_v47, %v1116_v6 }
 0x13b   :  { %2250 = vst.msk [vmem:[%s3581_s3 + $0x8] sm:$0xff] %vm1000_vm3, %v2081_v33  ;;  %v2169_v48 = vsel %vm2051_vm5, %v2168_v61, %v2167_v15  ;;  %v1907_v36 = vmax.f32 %v1803_v57, 0.0  ;;  %v1502_v7 = vmax.f32 %v1500_v43, %v1501_v13  ;;  %v1497_v2 = vmax.f32 %v1495_v53, %v1496_v56  ;;  %v3181_v33 = vpop.f32.mrb[44].mxu1 }
 0x13c   :  { %v2171_v39 = vsel %vm2054_vm6, %v2170_v25, %v2169_v48  ;;  %v1120_v18 = vsel %vm1000_vm3, %v2912_v21, -inf  ;;  %v1484_v12 = vsel %vm1000_vm3, %v2914_v22, -inf  ;;  %v1139_v37 = vrot.slane %v1138_v29, 1  ;;  %v3179_v25 = vpop.f32.mrb[44].mxu0 }
 0x13d   :  { %v2172_v45 = vrot.slane %v1907_v36, 4  ;;  %v1121_v24 = vrot.slane %v1120_v18, 4  ;;  %v1485_v16 = vrot.slane %v1484_v12, 4  ;;  %v3164_v3 = vadd.f32 %v2836_v26, %v1133_v46  ;;  %v3186_v36 = vpop.f32.mrb[45].mxu1 }
 0x13e   :  { %v1155_v53 = vsel %vm1000_vm3, %v2934_v60, -inf  ;;  %v1519_v43 = vsel %vm1000_vm3, %v2936_v62, -inf  ;;  %v1141_v21 = vsel %vm1000_vm3, %v2941_v4, -inf  ;;  %v1503_v47 = vrot.slane %v1502_v7, 1 }
 0x13f   :  { %v3173_v22 = vsel %vm2057_vm7, %v2172_v45, %v2171_v39  ;;  %v1122_v1 = vmax.f32 %v1120_v18, %v1121_v24  ;;  %v1486_v50 = vmax.f32 %v1484_v12, %v1485_v16  ;;  %v1118_v52 = vrot.slane %v1117_v44, 1  ;;  %v3192_v45 = vpop.f32.mrb[46].mxu1 }
 0x140   :  { %v1156_v30 = vrot.slane %v1155_v53, 4  ;;  %v1520_v59 = vrot.slane %v1519_v43, 4  ;;  %v1142_v6 = vrot.slane %v1141_v21, 4  ;;  %v1140_v34 = vmax.f32 %v1138_v29, %v1139_v37 }
 0x141   :  { %v1123_v13 = vrot.slane %v1122_v1, 2  ;;  %v1487_v8 = vrot.slane %v1486_v50, 2  ;;  %v1505_v60 = vsel %vm1000_vm3, %v2943_v41, -inf  ;;  %v1504_v56 = vmax.f32 %v1502_v7, %v1503_v47  ;;  %v3184_v41 = vpop.f32.mrb[45].mxu0 }
 0x142   :  { %v1157_v62 = vmax.f32 %v1155_v53, %v1156_v30  ;;  %v1521_v32 = vmax.f32 %v1519_v43, %v1520_v59  ;;  %v1143_v63 = vmax.f32 %v1141_v21, %v1142_v6  ;;  %v1506_v4 = vrot.slane %v1505_v60, 4 }
 0x143   :  { %v1124_v61 = vmax.f32 %v1122_v1, %v1123_v13  ;;  %v1488_v23 = vmax.f32 %v1486_v50, %v1487_v8  ;;  %v1162_v57 = vsel %vm1000_vm3, %v2947_v9, -inf  ;;  %v1805_v29 = vadd.f32 %v2836_v26, %v1497_v2  ;;  %v3190_v9 = vpop.f32.mrb[46].mxu0 }
 0x144   :  { %v1119_v15 = vmax.f32 %v1117_v44, %v1118_v52  ;;  %v1158_v46 = vrot.slane %v1157_v62, 2  ;;  %v1144_v48 = vrot.slane %v1143_v63, 2  ;;  %v1163_v18 = vrot.slane %v1162_v57, 4  ;;  %v3195_v16 = vpop.f32.mrb[47].mxu0 }
 0x145   :  { %v1125_v39 = vrot.slane %v1124_v61, 1  ;;  %v1489_v7 = vrot.slane %v1488_v23, 1  ;;  %v1526_v12 = vsel %vm1000_vm3, %v2949_v10, -inf  ;;  %v1754_v37 = vadd.f32 %v2836_v26, %v1140_v34 }
 0x146   :  { %v1522_v2 = vrot.slane %v1521_v32, 2  ;;  %v1145_v44 = vmax.f32 %v1143_v63, %v1144_v48  ;;  %v1507_v24 = vmax.f32 %v1505_v60, %v1506_v4  ;;  %v1806_v53 = vadd.f32 %v2836_v26, %v1504_v56 }
 0x147   :  { %v1126_v43 = vmax.f32 %v1124_v61, %v1125_v39  ;;  %v1490_v21 = vmax.f32 %v1488_v23, %v1489_v7  ;;  %v1527_v47 = vrot.slane %v1526_v12, 4  ;;  %v1857_v1 = vmax.f32 %v3164_v3, 0.0 }
 0x148   :  { %v1751_v10 = vadd.f32 %v2836_v26, %v1119_v15  ;;  %v1146_v50 = vrot.slane %v1145_v44, 1  ;;  %v1164_v52 = vmax.f32 %v1162_v57, %v1163_v18  ;;  %v1159_v6 = vmax.f32 %v1157_v62, %v1158_v46 }
 0x149   :  { %v1752_v30 = vadd.f32 %v2836_v26, %v1126_v43  ;;  %v1804_v59 = vadd.f32 %v2836_v26, %v1490_v21  ;;  %v1528_v34 = vmax.f32 %v1526_v12, %v1527_v47  ;;  %v1909_v13 = vmax.f32 %v1805_v29, 0.0 }
 0x14a   :  { %v1523_v8 = vmax.f32 %v1521_v32, %v1522_v2  ;;  %v1147_v60 = vmax.f32 %v1145_v44, %v1146_v50  ;;  %v1508_v63 = vrot.slane %v1507_v24, 2  ;;  %v1858_v4 = vmax.f32 %v1754_v37, 0.0 }
 0x14b   :  { %v1910_v56 = vmax.f32 %v1806_v53, 0.0  ;;  %v1856_v61 = vmax.f32 %v1752_v30, 0.0  ;;  %v1908_v23 = vmax.f32 %v1804_v59, 0.0  ;;  %v2084_v48 = vrot.slane %v1857_v1, 6 }
 0x14c   :  { %v1755_v3 = vadd.f32 %v2836_v26, %v1147_v60  ;;  %v1165_v15 = vrot.slane %v1164_v52, 2  ;;  %v1529_v39 = vrot.slane %v1528_v34, 2  ;;  %v1855_v57 = vmax.f32 %v1751_v10, 0.0 }
 0x14d   :  { %v2082_v7 = vrot.slane %v1856_v61, 7  ;;  %v2174_v18 = vrot.slane %v1908_v23, 3  ;;  %v1160_v43 = vrot.slane %v1159_v6, 1  ;;  %v2176_v21 = vrot.slane %v1909_v13, 2 }
 0x14e   :  { %v1524_v62 = vrot.slane %v1523_v8, 1  ;;  %v1859_v46 = vmax.f32 %v1755_v3, 0.0  ;;  %v1509_v29 = vmax.f32 %v1507_v24, %v1508_v63  ;;  %v2086_v32 = vrot.slane %v1858_v4, 5  ;;  %v3232_v3 = vld [vmem:[%s3580_s2] ss:$0 sm:$0xff] }
 0x14f   :  { %v2178_v12 = vrot.slane %v1910_v56, 1  ;;  %v2083_v37 = vsel %vm2048_vm4, %v2082_v7, %v1855_v57  ;;  %v2175_v2 = vsel %vm2060_vm8, %v2174_v18, %v3173_v22  ;;  %v1166_v53 = vmax.f32 %v1164_v52, %v1165_v15 }
 0x150   :  { %v2085_v44 = vsel %vm2051_vm5, %v2084_v48, %v2083_v37  ;;  %v2177_v26 = vsel %vm2063_vm9, %v2176_v21, %v2175_v2  ;;  %v1530_v47 = vmax.f32 %v1528_v34, %v1529_v39  ;;  %v1161_v10 = vmax.f32 %v1159_v6, %v1160_v43  ;;  %v3218_v34 = vpop.f32.mrb[47].mxu1 }
 0x151   :  { %v2179_v1 = vsel %vm2066_vm10, %v2178_v12, %v2177_v26  ;;  %v2087_v50 = vsel %vm2054_vm6, %v2086_v32, %v2085_v44  ;;  %v2088_v30 = vrot.slane %v1859_v46, 4  ;;  %v1525_v24 = vmax.f32 %v1523_v8, %v1524_v62  ;;  %v3242_v26 = vpop.f32.mrb[48].mxu0 }
 0x152   :  { %2257 = vst.msk [vmem:[%s3581_s3 + $0x40] sm:$0xff] %vm1000_vm3, %v2179_v1  ;;  %v1510_v59 = vrot.slane %v1509_v29, 1  ;;  %v1148_v22 = vsel %vm1000_vm3, %v2953_v20, -inf  ;;  %v1512_v52 = vsel %vm1000_vm3, %v2955_v27, -inf  ;;  %v1183_v63 = vsel %vm1000_vm3, %v2963_v0, -inf  ;;  %v3244_v1 = vpop.f32.mrb[48].mxu1 }
 0x153   :  { %v3221_v6 = vsel %vm2057_vm7, %v2088_v30, %v2087_v50  ;;  %v1149_v13 = vrot.slane %v1148_v22, 4  ;;  %v1513_v60 = vrot.slane %v1512_v52, 4  ;;  %v1167_v4 = vrot.slane %v1166_v53, 1 }
 0x154   :  { %v1531_v56 = vrot.slane %v1530_v47, 1  ;;  %v1184_v8 = vrot.slane %v1183_v63, 4  ;;  %v1547_v61 = vsel %vm1000_vm3, %v2965_v58, -inf  ;;  %v1757_v15 = vadd.f32 %v3232_v3, %v1161_v10 }
 0x155   :  { %v1150_v23 = vmax.f32 %v1148_v22, %v1149_v13  ;;  %v1514_v48 = vmax.f32 %v1512_v52, %v1513_v60  ;;  %v1809_v0 = vadd.f32 %v3232_v3, %v1525_v24  ;;  %v1548_v39 = vrot.slane %v1547_v61, 4  ;;  %v3246_v24 = vpop.f32.mrb[49].mxu0 }
 0x156   :  { %v1169_v57 = vsel %vm1000_vm3, %v2968_v17, -inf  ;;  %v1185_v18 = vmax.f32 %v1183_v63, %v1184_v8  ;;  %v1533_v43 = vsel %vm1000_vm3, %v2970_v55, -inf  ;;  %v1511_v21 = vmax.f32 %v1509_v29, %v1510_v59  ;;  %v3248_v55 = vpop.f32.mrb[49].mxu1  ;;  %v3612_v59 = vld [vmem:[#allocation2_spill] sm:$0xff]  ;;  %v3252_v52 = vpop.f32.mrb[50].mxu0 }
 0x157   :  { %v1151_v58 = vrot.slane %v1150_v23, 2  ;;  %v1515_v7 = vrot.slane %v1514_v48, 2  ;;  %v1168_v62 = vmax.f32 %v1166_v53, %v1167_v4  ;;  %v1532_v46 = vmax.f32 %v1530_v47, %v1531_v56  ;;  %v3258_v56 = vpop.f32.mrb[51].mxu0 }
 0x158   :  { %v1534_v32 = vrot.slane %v1533_v43, 4  ;;  %v1170_v2 = vrot.slane %v1169_v57, 4  ;;  %v1190_v44 = vsel %vm1000_vm3, %v2978_v31, -inf  ;;  %v1861_v17 = vmax.f32 %v1757_v15, 0.0  ;;  %v3254_v31 = vpop.f32.mrb[50].mxu1  ;;  %3614 = vst [vmem:[#allocation29_spill] sm:$0xff] %v3258_v56 }
 0x159   :  { %v1152_v12 = vmax.f32 %v1150_v23, %v1151_v58  ;;  %v1516_v37 = vmax.f32 %v1514_v48, %v1515_v7  ;;  %v1549_v10 = vmax.f32 %v1547_v61, %v1548_v39  ;;  %v1191_v30 = vrot.slane %v1190_v44, 4  ;;  %3613 = vst [vmem:[#allocation2_spill] sm:$0xff] %v3254_v31 }
 0x15a   :  { %v1535_v50 = vmax.f32 %v1533_v43, %v1534_v32  ;;  %v1186_v47 = vrot.slane %v1185_v18, 2  ;;  %v1554_v22 = vsel %vm1000_vm3, %v3612_v59, -inf  ;;  %v1758_v13 = vadd.f32 %v3232_v3, %v1168_v62 }
 0x15b   :  { %v1153_v29 = vrot.slane %v1152_v12, 1  ;;  %v1517_v53 = vrot.slane %v1516_v37, 1  ;;  %v1810_v60 = vadd.f32 %v3232_v3, %v1532_v46  ;;  %v1192_v4 = vmax.f32 %v1190_v44, %v1191_v30 }
 0x15c   :  { %v1536_v63 = vrot.slane %v1535_v50, 2  ;;  %v1171_v23 = vmax.f32 %v1169_v57, %v1170_v2  ;;  %v1555_v48 = vrot.slane %v1554_v22, 4  ;;  %v1913_v15 = vmax.f32 %v1809_v0, 0.0 }
 0x15d   :  { %v1154_v8 = vmax.f32 %v1152_v12, %v1153_v29  ;;  %v1518_v61 = vmax.f32 %v1516_v37, %v1517_v53  ;;  %v1807_v39 = vadd.f32 %v3232_v3, %v1511_v21  ;;  %v1550_v58 = vrot.slane %v1549_v10, 2 }
 0x15e   :  { %v1537_v7 = vmax.f32 %v1535_v50, %v1536_v63  ;;  %v1187_v62 = vmax.f32 %v1185_v18, %v1186_v47  ;;  %v1556_v59 = vmax.f32 %v1554_v22, %v1555_v48  ;;  %v1862_v46 = vmax.f32 %v1758_v13, 0.0 }
 0x15f   :  { %v1756_v43 = vadd.f32 %v3232_v3, %v1154_v8  ;;  %v1808_v32 = vadd.f32 %v3232_v3, %v1518_v61  ;;  %v1914_v20 = vmax.f32 %v1810_v60, 0.0  ;;  %v1193_v30 = vrot.slane %v1192_v4, 2 }
 0x160   :  { %v1538_v44 = vrot.slane %v1537_v7, 1  ;;  %v1172_v37 = vrot.slane %v1171_v23, 2  ;;  %v1557_v57 = vrot.slane %v1556_v59, 2  ;;  %v2092_v2 = vrot.slane %v1861_v17, 2 }
 0x161   :  { %v1860_v27 = vmax.f32 %v1756_v43, 0.0  ;;  %v1912_v12 = vmax.f32 %v1808_v32, 0.0  ;;  %v2182_v0 = vrot.slane %v1913_v15, 6  ;;  %v1551_v29 = vmax.f32 %v1549_v10, %v1550_v58  ;;  %v3273_v43 = vpop.f32.mrb[51].mxu1 }
 0x162   :  { %v1539_v21 = vmax.f32 %v1537_v7, %v1538_v44  ;;  %v1911_v53 = vmax.f32 %v1807_v39, 0.0  ;;  %v1188_v8 = vrot.slane %v1187_v62, 1  ;;  %v2094_v56 = vrot.slane %v1862_v46, 1  ;;  %v3615_v7 = vld [vmem:[#allocation3_spill] sm:$0xff]  ;;  %v3618_v44 = vld [vmem:[#allocation5_spill] sm:$0xff] }
 0x163   :  { %v2090_v50 = vrot.slane %v1860_v27, 3  ;;  %v2180_v63 = vrot.slane %v1912_v12, 7  ;;  %v2184_v61 = vrot.slane %v1914_v20, 5  ;;  %v1194_v47 = vmax.f32 %v1192_v4, %v1193_v30  ;;  %3616 = vst [vmem:[#allocation3_spill] sm:$0xff] %v3273_v43  ;;  %v3619_v12 = vld [vmem:[#allocation6_spill] sm:$0xff] }
 0x164   :  { %v1811_v18 = vadd.f32 %v3232_v3, %v1539_v21  ;;  %v1173_v60 = vmax.f32 %v1171_v23, %v1172_v37  ;;  %v1558_v48 = vmax.f32 %v1556_v59, %v1557_v57  ;;  %v1552_v15 = vrot.slane %v1551_v29, 1  ;;  %v3617_v59 = vld [vmem:[#allocation4_spill] sm:$0xff] }
 0x165   :  { %v2091_v22 = vsel %vm2060_vm8, %v2090_v50, %v3221_v6  ;;  %v2181_v13 = vsel %vm2048_vm4, %v2180_v63, %v1911_v53  ;;  %v1189_v58 = vmax.f32 %v1187_v62, %v1188_v8  ;;  %v1176_v4 = vsel %vm1000_vm3, %v3615_v7, -inf  ;;  %v3620_v8 = vld [vmem:[#allocation7_spill] sm:$0xff]  ;;  %v3621_v7 = vld [vmem:[#allocation8_spill] sm:$0xff] }
 0x166   :  { %v2093_v17 = vsel %vm2063_vm9, %v2092_v2, %v2091_v22  ;;  %v2183_v10 = vsel %vm2051_vm5, %v2182_v0, %v2181_v13  ;;  %v1915_v27 = vmax.f32 %v1811_v18, 0.0  ;;  %v1195_v23 = vrot.slane %v1194_v47, 1 }
 0x167   :  { %v2095_v39 = vsel %vm2066_vm10, %v2094_v56, %v2093_v17  ;;  %v2185_v20 = vsel %vm2054_vm6, %v2184_v61, %v2183_v10  ;;  %v1177_v32 = vrot.slane %v1176_v4, 4  ;;  %v1540_v46 = vsel %vm1000_vm3, %v3617_v59, -inf }
 0x168   :  { %2251 = vst.msk [vmem:[%s3581_s3 + $0x10] sm:$0xff] %vm1000_vm3, %v2095_v39  ;;  %v2186_v6 = vrot.slane %v1915_v27, 4  ;;  %v1559_v56 = vrot.slane %v1558_v48, 1  ;;  %v1541_v62 = vrot.slane %v1540_v46, 4  ;;  %v1211_v30 = vsel %vm1000_vm3, %v3618_v44, -inf }
 0x169   :  { %v1575_v37 = vsel %vm1000_vm3, %v3619_v12, -inf  ;;  %v1174_v57 = vrot.slane %v1173_v60, 1  ;;  %v1178_v0 = vmax.f32 %v1176_v4, %v1177_v32  ;;  %v1212_v21 = vrot.slane %v1211_v30, 4 }
 0x16a   :  { %v3286_v2 = vsel %vm2057_vm7, %v2186_v6, %v2185_v20  ;;  %v1553_v53 = vmax.f32 %v1551_v29, %v1552_v15  ;;  %v1542_v50 = vmax.f32 %v1540_v46, %v1541_v62  ;;  %v1576_v63 = vrot.slane %v1575_v37, 4  ;;  %v3622_v29 = vld [vmem:[#allocation9_spill] sm:$0xff] }
 0x16b   :  { %v1197_v61 = vsel %vm1000_vm3, %v3620_v8, -inf  ;;  %v1761_v18 = vadd.f32 %v3232_v3, %v1189_v58  ;;  %v1196_v22 = vmax.f32 %v1194_v47, %v1195_v23  ;;  %v1179_v13 = vrot.slane %v1178_v0, 2 }
 0x16c   :  { %v1198_v17 = vrot.slane %v1197_v61, 4  ;;  %v1560_v10 = vmax.f32 %v1558_v48, %v1559_v56  ;;  %v1543_v27 = vrot.slane %v1542_v50, 2  ;;  %v1213_v39 = vmax.f32 %v1211_v30, %v1212_v21  ;;  %v3623_v48 = vld [vmem:[#allocation10_spill] sm:$0xff] }
 0x16d   :  { %v1561_v20 = vsel %vm1000_vm3, %v3621_v7, -inf  ;;  %v1180_v6 = vmax.f32 %v1178_v0, %v1179_v13  ;;  %v1577_v4 = vmax.f32 %v1575_v37, %v1576_v63  ;;  %v1218_v15 = vsel %vm1000_vm3, %v3622_v29, -inf }
 0x16e   :  { %v1199_v32 = vmax.f32 %v1197_v61, %v1198_v17  ;;  %v1813_v59 = vadd.f32 %v3232_v3, %v1553_v53  ;;  %v1175_v46 = vmax.f32 %v1173_v60, %v1174_v57  ;;  %v1544_v62 = vmax.f32 %v1542_v50, %v1543_v27 }
 0x16f   :  { %v1219_v58 = vrot.slane %v1218_v15, 4  ;;  %v1181_v47 = vrot.slane %v1180_v6, 1  ;;  %v1562_v44 = vrot.slane %v1561_v20, 4  ;;  %v1582_v56 = vsel %vm1000_vm3, %v3623_v48, -inf }
 0x170   :  { %v1200_v23 = vrot.slane %v1199_v32, 2  ;;  %v1762_v30 = vadd.f32 %v3232_v3, %v1196_v22  ;;  %v1814_v12 = vadd.f32 %v3232_v3, %v1560_v10  ;;  %v1545_v37 = vrot.slane %v1544_v62, 1 }
 0x171   :  { %v1214_v0 = vrot.slane %v1213_v39, 2  ;;  %v1182_v21 = vmax.f32 %v1180_v6, %v1181_v47  ;;  %v1578_v63 = vrot.slane %v1577_v4, 2  ;;  %v1583_v61 = vrot.slane %v1582_v56, 4 }
 0x172   :  { %v1201_v8 = vmax.f32 %v1199_v32, %v1200_v23  ;;  %v1865_v53 = vmax.f32 %v1761_v18, 0.0  ;;  %v1759_v60 = vadd.f32 %v3232_v3, %v1175_v46  ;;  %v1546_v57 = vmax.f32 %v1544_v62, %v1545_v37 }
 0x173   :  { %v1220_v50 = vmax.f32 %v1218_v15, %v1219_v58  ;;  %v1760_v13 = vadd.f32 %v3232_v3, %v1182_v21  ;;  %v1563_v27 = vmax.f32 %v1561_v20, %v1562_v44  ;;  %v1584_v7 = vmax.f32 %v1582_v56, %v1583_v61 }
 0x174   :  { %v1202_v17 = vrot.slane %v1201_v8, 1  ;;  %v1917_v29 = vmax.f32 %v1813_v59, 0.0  ;;  %v1866_v22 = vmax.f32 %v1762_v30, 0.0  ;;  %v1812_v10 = vadd.f32 %v3232_v3, %v1546_v57 }
 0x175   :  { %v1215_v48 = vmax.f32 %v1213_v39, %v1214_v0  ;;  %v1918_v43 = vmax.f32 %v1814_v12, 0.0  ;;  %v1864_v6 = vmax.f32 %v1760_v13, 0.0  ;;  %v1579_v47 = vmax.f32 %v1577_v4, %v1578_v63 }
 0x176   :  { %v1203_v32 = vmax.f32 %v1201_v8, %v1202_v17  ;;  %v2098_v23 = vrot.slane %v1865_v53, 6  ;;  %v1916_v18 = vmax.f32 %v1812_v10, 0.0  ;;  %v1221_v31 = vrot.slane %v1220_v50, 2  ;;  %v3624_v17 = vld [vmem:[#allocation11_spill] sm:$0xff] }
 0x177   :  { %v1585_v46 = vrot.slane %v1584_v7, 2  ;;  %v1863_v62 = vmax.f32 %v1759_v60, 0.0  ;;  %v2096_v15 = vrot.slane %v1864_v6, 7  ;;  %v1564_v37 = vrot.slane %v1563_v27, 2 }
 0x178   :  { %v1763_v58 = vadd.f32 %v3232_v3, %v1203_v32  ;;  %v2190_v20 = vrot.slane %v1917_v29, 2  ;;  %v2100_v44 = vrot.slane %v1866_v22, 5  ;;  %v2188_v59 = vrot.slane %v1916_v18, 3  ;;  %v3625_v22 = vld [vmem:[#allocation12_spill] sm:$0xff]  ;;  %v3628_v18 = vld [vmem:[#allocation13_spill] sm:$0xff] }
 0x179   :  { %v1216_v56 = vrot.slane %v1215_v48, 1  ;;  %v2192_v30 = vrot.slane %v1918_v43, 1  ;;  %v2097_v39 = vsel %vm2048_vm4, %v2096_v15, %v1863_v62  ;;  %v1580_v12 = vrot.slane %v1579_v47, 1 }
 0x17a   :  { %v1867_v0 = vmax.f32 %v1763_v58, 0.0  ;;  %v2099_v4 = vsel %vm2051_vm5, %v2098_v23, %v2097_v39  ;;  %v2189_v21 = vsel %vm2060_vm8, %v2188_v59, %v3286_v2  ;;  %v1222_v63 = vmax.f32 %v1220_v50, %v1221_v31  ;;  %v3629_v58 = vld [vmem:[#allocation14_spill] sm:$0xff]  ;;  %v3630_v59 = vld [vmem:[#allocation15_spill] sm:$0xff] }
 0x17b   :  { %v1586_v8 = vmax.f32 %v1584_v7, %v1585_v46  ;;  %v2191_v61 = vsel %vm2063_vm9, %v2190_v20, %v2189_v21  ;;  %v2101_v53 = vsel %vm2054_vm6, %v2100_v44, %v2099_v4  ;;  %v1565_v57 = vmax.f32 %v1563_v27, %v1564_v37 }
 0x17c   :  { %v2102_v60 = vrot.slane %v1867_v0, 4  ;;  %v2193_v13 = vsel %vm2066_vm10, %v2192_v30, %v2191_v61  ;;  %v1217_v43 = vmax.f32 %v1215_v48, %v1216_v56  ;;  %v1204_v29 = vsel %vm1000_vm3, %v3624_v17, -inf  ;;  %v3631_v30 = vld [vmem:[#allocation16_spill] sm:$0xff] }
 0x17d   :  { %v1568_v10 = vsel %vm1000_vm3, %v3625_v22, -inf  ;;  %v3626_v6 = vrot.slane %v2998_v49, 2  ;;  %2258 = vst.msk [vmem:[%s3581_s3 + $0x48] sm:$0xff] %vm1000_vm3, %v2193_v13  ;;  %v1205_v50 = vrot.slane %v1204_v29, 4  ;;  %v3627_v7 = vrot.slane %v3028_v28, 4 }
 0x17e   :  { %v3325_v2 = vsel %vm2057_vm7, %v2102_v60, %v2101_v53  ;;  %v1569_v27 = vrot.slane %v1568_v10, 4  ;;  %v1223_v32 = vrot.slane %v1222_v63, 1  ;;  %v1587_v23 = vrot.slane %v1586_v8, 1  ;;  %v3632_v53 = vld [vmem:[#allocation17_spill] sm:$0xff] }
 0x17f   :  { %v3318_v31 = vmax.f32 %v2998_v49, %v3626_v6  ;;  %v3330_v48 = vmax.f32 %v3028_v28, %v3627_v7  ;;  %v1239_v49 = vsel %vm1000_vm3, %v3628_v18, -inf  ;;  %v1581_v46 = vmax.f32 %v1579_v47, %v1580_v12 }
 0x180   :  { %v1206_v62 = vmax.f32 %v1204_v29, %v1205_v50  ;;  %v1570_v15 = vmax.f32 %v1568_v10, %v1569_v27  ;;  %v1603_v37 = vsel %vm1000_vm3, %v3629_v58, -inf  ;;  %v1765_v20 = vadd.f32 %v3232_v3, %v1217_v43  ;;  %v3633_v50 = vld [vmem:[#allocation18_spill] sm:$0xff] }
 0x181   :  { %v1566_v44 = vrot.slane %v1565_v57, 1  ;;  %v1225_v56 = vsel %vm1000_vm3, %v3630_v59, -inf  ;;  %v1589_v28 = vsel %vm1000_vm3, %v3631_v30, -inf  ;;  %v1240_v4 = vrot.slane %v1239_v49, 4 }
 0x182   :  { %v1207_v39 = vrot.slane %v1206_v62, 2  ;;  %v1571_v0 = vrot.slane %v1570_v15, 2  ;;  %v1590_v21 = vrot.slane %v1589_v28, 4  ;;  %v1224_v61 = vmax.f32 %v1222_v63, %v1223_v32 }
 0x183   :  { %v1588_v47 = vmax.f32 %v1586_v8, %v1587_v23  ;;  %v1604_v12 = vrot.slane %v1603_v37, 4  ;;  %v1246_v60 = vsel %vm1000_vm3, %v3632_v53, -inf  ;;  %v1817_v13 = vadd.f32 %v3232_v3, %v1581_v46 }
 0x184   :  { %v1208_v43 = vmax.f32 %v1206_v62, %v1207_v39  ;;  %v1572_v17 = vmax.f32 %v1570_v15, %v1571_v0  ;;  %v1591_v29 = vmax.f32 %v1589_v28, %v1590_v21  ;;  %v1567_v22 = vmax.f32 %v1565_v57, %v1566_v44 }
 0x185   :  { %v1226_v10 = vrot.slane %v1225_v56, 4  ;;  %v1247_v6 = vrot.slane %v1246_v60, 4  ;;  %v1610_v27 = vsel %vm1000_vm3, %v3633_v50, -inf  ;;  %v1241_v58 = vmax.f32 %v1239_v49, %v1240_v4 }
 0x186   :  { %v1209_v7 = vrot.slane %v1208_v43, 1  ;;  %v1573_v18 = vrot.slane %v1572_v17, 1  ;;  %v1592_v63 = vrot.slane %v1591_v29, 2  ;;  %v1766_v8 = vadd.f32 %v3232_v3, %v1224_v61 }
 0x187   :  { %v1818_v32 = vadd.f32 %v3232_v3, %v1588_v47  ;;  %v1605_v23 = vmax.f32 %v1603_v37, %v1604_v12  ;;  %v1611_v59 = vrot.slane %v1610_v27, 4  ;;  %v1248_v30 = vmax.f32 %v1246_v60, %v1247_v6 }
 0x188   :  { %v1210_v46 = vmax.f32 %v1208_v43, %v1209_v7  ;;  %v1574_v62 = vmax.f32 %v1572_v17, %v1573_v18  ;;  %v1593_v15 = vmax.f32 %v1591_v29, %v1592_v63  ;;  %v1869_v57 = vmax.f32 %v1765_v20, 0.0 }
 0x189   :  { %v1815_v44 = vadd.f32 %v3232_v3, %v1567_v22  ;;  %v1227_v28 = vmax.f32 %v1225_v56, %v1226_v10  ;;  %v1612_v39 = vmax.f32 %v1610_v27, %v1611_v59  ;;  %v1242_v4 = vrot.slane %v1241_v58, 2 }
 0x18a   :  { %v1764_v0 = vadd.f32 %v3232_v3, %v1210_v46  ;;  %v1816_v49 = vadd.f32 %v3232_v3, %v1574_v62  ;;  %v1594_v21 = vrot.slane %v1593_v15, 1  ;;  %v1921_v61 = vmax.f32 %v1817_v13, 0.0 }
 0x18b   :  { %v1870_v53 = vmax.f32 %v1766_v8, 0.0  ;;  %v1922_v47 = vmax.f32 %v1818_v32, 0.0  ;;  %v1606_v37 = vrot.slane %v1605_v23, 2  ;;  %v1249_v29 = vrot.slane %v1248_v30, 2 }
 0x18c   :  { %v1868_v12 = vmax.f32 %v1764_v0, 0.0  ;;  %v1920_v43 = vmax.f32 %v1816_v49, 0.0  ;;  %v1595_v17 = vmax.f32 %v1593_v15, %v1594_v21  ;;  %v2106_v60 = vrot.slane %v1869_v57, 2  ;;  %v3635_v21 = vld [vmem:[#allocation20_spill] sm:$0xff] }
 0x18d   :  { %v1919_v20 = vmax.f32 %v1815_v44, 0.0  ;;  %v1228_v6 = vrot.slane %v1227_v28, 2  ;;  %v1613_v22 = vrot.slane %v1612_v39, 2  ;;  %v1243_v50 = vmax.f32 %v1241_v58, %v1242_v4 }
 0x18e   :  { %v2104_v56 = vrot.slane %v1868_v12, 3  ;;  %v2194_v10 = vrot.slane %v1920_v43, 7  ;;  %v1819_v27 = vadd.f32 %v3232_v3, %v1595_v17  ;;  %v2196_v7 = vrot.slane %v1921_v61, 6 }
 0x18f   :  { %v2108_v18 = vrot.slane %v1870_v53, 1  ;;  %v2198_v63 = vrot.slane %v1922_v47, 5  ;;  %v1607_v13 = vmax.f32 %v1605_v23, %v1606_v37  ;;  %v1250_v46 = vmax.f32 %v1248_v30, %v1249_v29  ;;  %v3634_v23 = vld [vmem:[#allocation19_spill] sm:$0xff] }
 0x190   :  { %v2105_v8 = vsel %vm2060_vm8, %v2104_v56, %v3325_v2  ;;  %v2195_v32 = vsel %vm2048_vm4, %v2194_v10, %v1919_v20  ;;  %v1923_v59 = vmax.f32 %v1819_v27, 0.0  ;;  %v1229_v57 = vmax.f32 %v1227_v28, %v1228_v6 }
 0x191   :  { %v2107_v62 = vsel %vm2063_vm9, %v2106_v60, %v2105_v8  ;;  %v2197_v15 = vsel %vm2051_vm5, %v2196_v7, %v2195_v32  ;;  %v1614_v44 = vmax.f32 %v1612_v39, %v1613_v22  ;;  %v1244_v0 = vrot.slane %v1243_v50, 1 }
 0x192   :  { %v2109_v58 = vsel %vm2066_vm10, %v2108_v18, %v2107_v62  ;;  %v2199_v49 = vsel %vm2054_vm6, %v2198_v63, %v2197_v15  ;;  %v2200_v4 = vrot.slane %v1923_v59, 4  ;;  %v1608_v2 = vrot.slane %v1607_v13, 1 }
 0x193   :  { %2252 = vst.msk [vmem:[%s3581_s3 + $0x18] sm:$0xff] %vm1000_vm3, %v2109_v58  ;;  %v1232_v30 = vsel %vm1000_vm3, %v3634_v23, -inf  ;;  %v1596_v61 = vsel %vm1000_vm3, %v3635_v21, -inf  ;;  %v1267_v28 = vsel %vm1000_vm3, %v3072_v51, -inf  ;;  %v1251_v53 = vrot.slane %v1250_v46, 1 }
 0x194   :  { %v3370_v39 = vsel %vm2057_vm7, %v2200_v4, %v2199_v49  ;;  %v1233_v47 = vrot.slane %v1232_v30, 4  ;;  %v1597_v37 = vrot.slane %v1596_v61, 4  ;;  %v1615_v12 = vrot.slane %v1614_v44, 1 }
 0x195   :  { %v1268_v43 = vrot.slane %v1267_v28, 4  ;;  %v1631_v17 = vsel %vm1000_vm3, %v3074_v11, -inf  ;;  %v1253_v29 = vsel %vm1000_vm3, %v3077_v19, -inf  ;;  %v1230_v60 = vrot.slane %v1229_v57, 1 }
 0x196   :  { %v1234_v20 = vmax.f32 %v1232_v30, %v1233_v47  ;;  %v1598_v6 = vmax.f32 %v1596_v61, %v1597_v37  ;;  %v1632_v22 = vrot.slane %v1631_v17, 4  ;;  %v1245_v56 = vmax.f32 %v1243_v50, %v1244_v0 }
 0x197   :  { %v1609_v51 = vmax.f32 %v1607_v13, %v1608_v2  ;;  %v1254_v10 = vrot.slane %v1253_v29, 4  ;;  %v1274_v27 = vsel %vm1000_vm3, %v3083_v40, -inf  ;;  %v1252_v7 = vmax.f32 %v1250_v46, %v1251_v53 }
 0x198   :  { %v1235_v18 = vrot.slane %v1234_v20, 2  ;;  %v1599_v63 = vrot.slane %v1598_v6, 2  ;;  %v1269_v8 = vmax.f32 %v1267_v28, %v1268_v43  ;;  %v1616_v32 = vmax.f32 %v1614_v44, %v1615_v12 }
 0x199   :  { %v1633_v59 = vmax.f32 %v1631_v17, %v1632_v22  ;;  %v1255_v11 = vmax.f32 %v1253_v29, %v1254_v10  ;;  %v1617_v19 = vsel %vm1000_vm3, %v3079_v42, -inf  ;;  %v1275_v58 = vrot.slane %v1274_v27, 4 }
 0x19a   :  { %v1236_v62 = vmax.f32 %v1234_v20, %v1235_v18  ;;  %v1600_v15 = vmax.f32 %v1598_v6, %v1599_v63  ;;  %v1638_v50 = vsel %vm1000_vm3, %v3085_v14, -inf  ;;  %v1769_v13 = vadd.f32 %v3232_v3, %v1245_v56 }
 0x19b   :  { %v1821_v40 = vadd.f32 %v3232_v3, %v1609_v51  ;;  %v1231_v46 = vmax.f32 %v1229_v57, %v1230_v60  ;;  %v1256_v0 = vrot.slane %v1255_v11, 2  ;;  %v1270_v44 = vrot.slane %v1269_v8, 2 }
 0x19c   :  { %v1237_v49 = vrot.slane %v1236_v62, 1  ;;  %v1601_v4 = vrot.slane %v1600_v15, 1  ;;  %v1639_v2 = vrot.slane %v1638_v50, 4  ;;  %v1770_v23 = vadd.f32 %v3232_v3, %v1252_v7 }
 0x19d   :  { %v1822_v42 = vadd.f32 %v3232_v3, %v1616_v32  ;;  %v1257_v30 = vmax.f32 %v1255_v11, %v1256_v0  ;;  %v1618_v21 = vrot.slane %v1617_v19, 4  ;;  %v1634_v53 = vrot.slane %v1633_v59, 2 }
 0x19e   :  { %v1238_v61 = vmax.f32 %v1236_v62, %v1237_v49  ;;  %v1602_v28 = vmax.f32 %v1600_v15, %v1601_v4  ;;  %v1276_v14 = vmax.f32 %v1274_v27, %v1275_v58  ;;  %v1873_v47 = vmax.f32 %v1769_v13, 0.0 }
 0x19f   :  { %v1767_v37 = vadd.f32 %v3232_v3, %v1231_v46  ;;  %v1258_v12 = vrot.slane %v1257_v30, 1  ;;  %v1640_v57 = vmax.f32 %v1638_v50, %v1639_v2  ;;  %v1925_v43 = vmax.f32 %v1821_v40, 0.0 }
 0x1a0   :  { %v1768_v17 = vadd.f32 %v3232_v3, %v1238_v61  ;;  %v1820_v29 = vadd.f32 %v3232_v3, %v1602_v28  ;;  %v1271_v60 = vmax.f32 %v1269_v8, %v1270_v44  ;;  %v1874_v20 = vmax.f32 %v1770_v23, 0.0 }
 0x1a1   :  { %v1926_v6 = vmax.f32 %v1822_v42, 0.0  ;;  %v1259_v22 = vmax.f32 %v1257_v30, %v1258_v12  ;;  %v1619_v56 = vmax.f32 %v1617_v19, %v1618_v21  ;;  %v1635_v7 = vmax.f32 %v1633_v59, %v1634_v53 }
 0x1a2   :  { %v1872_v51 = vmax.f32 %v1768_v17, 0.0  ;;  %v1924_v10 = vmax.f32 %v1820_v29, 0.0  ;;  %v1277_v18 = vrot.slane %v1276_v14, 2  ;;  %v2112_v27 = vrot.slane %v1873_v47, 6 }
 0x1a3   :  { %v1871_v63 = vmax.f32 %v1767_v37, 0.0  ;;  %v1771_v32 = vadd.f32 %v3232_v3, %v1259_v22  ;;  %v1641_v11 = vrot.slane %v1640_v57, 2  ;;  %v2204_v62 = vrot.slane %v1925_v43, 2 }
 0x1a4   :  { %v2110_v15 = vrot.slane %v1872_v51, 7  ;;  %v2202_v58 = vrot.slane %v1924_v10, 3  ;;  %v1272_v50 = vrot.slane %v1271_v60, 1  ;;  %v2114_v13 = vrot.slane %v1874_v20, 5 }
 0x1a5   :  { %v2206_v40 = vrot.slane %v1926_v6, 1  ;;  %v1875_v8 = vmax.f32 %v1771_v32, 0.0  ;;  %v1620_v46 = vrot.slane %v1619_v56, 2  ;;  %v1636_v59 = vrot.slane %v1635_v7, 1  ;;  %v3638_v6 = vld [vmem:[#allocation25_spill] sm:$0xff] }
 0x1a6   :  { %v2111_v0 = vsel %vm2048_vm4, %v2110_v15, %v1871_v63  ;;  %v2203_v19 = vsel %vm2060_vm8, %v2202_v58, %v3370_v39  ;;  %v1278_v49 = vmax.f32 %v1276_v14, %v1277_v18  ;;  %v1642_v23 = vmax.f32 %v1640_v57, %v1641_v11  ;;  %v3636_v14 = vld [vmem:[#allocation22_spill] sm:$0xff] }
 0x1a7   :  { %v2113_v4 = vsel %vm2051_vm5, %v2112_v27, %v2111_v0  ;;  %v2205_v44 = vsel %vm2063_vm9, %v2204_v62, %v2203_v19  ;;  %v2116_v2 = vrot.slane %v1875_v8, 4  ;;  %v1375_v42 = vrot.slane %v3330_v48, 2  ;;  %v3639_v27 = vld [vmem:[#allocation24_spill] sm:$0xff]  ;;  %v3640_v63 = vld [vmem:[#allocation26_spill] sm:$0xff]  ;;  %v3641_v8 = vld [vmem:[#allocation27_spill] sm:$0xff] }
 0x1a8   :  { %v2207_v30 = vsel %vm2066_vm10, %v2206_v40, %v2205_v44  ;;  %v1273_v21 = vmax.f32 %v1271_v60, %v1272_v50  ;;  %v2115_v61 = vsel %vm2054_vm6, %v2114_v13, %v2113_v4  ;;  %v1260_v28 = vsel %vm1000_vm3, %v3090_v5, -inf  ;;  %v3637_v60 = vld [vmem:[#allocation23_spill] sm:$0xff] }
 0x1a9   :  { %2259 = vst.msk [vmem:[%s3581_s3 + $0x50] sm:$0xff] %vm1000_vm3, %v2207_v30  ;;  %v3403_v39 = vsel %vm2057_vm7, %v2116_v2, %v2115_v61  ;;  %v1624_v53 = vsel %vm1000_vm3, %v3109_v35, -inf  ;;  %v1295_v47 = vsel %vm1000_vm3, %v3636_v14, -inf  ;;  %v1637_v37 = vmax.f32 %v1635_v7, %v1636_v59 }
 0x1aa   :  { %v1621_v12 = vmax.f32 %v1619_v56, %v1620_v46  ;;  %v1261_v57 = vrot.slane %v1260_v28, 4  ;;  %v1625_v43 = vrot.slane %v1624_v53, 4  ;;  %v1279_v17 = vrot.slane %v1278_v49, 1 }
 0x1ab   :  { %v1643_v29 = vrot.slane %v1642_v23, 1  ;;  %v1659_v20 = vsel %vm1000_vm3, %v3637_v60, -inf  ;;  %v1645_v22 = vsel %vm1000_vm3, %v3638_v6, -inf  ;;  %v1773_v5 = vadd.f32 %v3232_v3, %v1273_v21 }
 0x1ac   :  { %v1262_v51 = vmax.f32 %v1260_v28, %v1261_v57  ;;  %v1626_v10 = vmax.f32 %v1624_v53, %v1625_v43  ;;  %v1296_v35 = vrot.slane %v1295_v47, 4  ;;  %v1660_v18 = vrot.slane %v1659_v20, 4 }
 0x1ad   :  { %v1281_v7 = vsel %vm1000_vm3, %v3639_v27, -inf  ;;  %v1646_v56 = vrot.slane %v1645_v22, 4  ;;  %v1302_v32 = vsel %vm1000_vm3, %v3640_v63, -inf  ;;  %v1622_v11 = vrot.slane %v1621_v12, 1 }
 0x1ae   :  { %v1263_v62 = vrot.slane %v1262_v51, 2  ;;  %v1627_v15 = vrot.slane %v1626_v10, 2  ;;  %v1303_v58 = vrot.slane %v1302_v32, 4  ;;  %v1280_v50 = vmax.f32 %v1278_v49, %v1279_v17 }
 0x1af   :  { %v1644_v13 = vmax.f32 %v1642_v23, %v1643_v29  ;;  %v1647_v40 = vmax.f32 %v1645_v22, %v1646_v56  ;;  %v1666_v46 = vsel %vm1000_vm3, %v3641_v8, -inf  ;;  %v1297_v59 = vmax.f32 %v1295_v47, %v1296_v35 }
 0x1b0   :  { %v1264_v0 = vmax.f32 %v1262_v51, %v1263_v62  ;;  %v1628_v19 = vmax.f32 %v1626_v10, %v1627_v15  ;;  %v1282_v4 = vrot.slane %v1281_v7, 4  ;;  %v1825_v44 = vadd.f32 %v3232_v3, %v1637_v37 }
 0x1b1   :  { %v1661_v2 = vmax.f32 %v1659_v20, %v1660_v18  ;;  %v1648_v30 = vrot.slane %v1647_v40, 2  ;;  %v1667_v21 = vrot.slane %v1666_v46, 4  ;;  %v1623_v61 = vmax.f32 %v1621_v12, %v1622_v11 }
 0x1b2   :  { %v1265_v28 = vrot.slane %v1264_v0, 1  ;;  %v1629_v53 = vrot.slane %v1628_v19, 1  ;;  %v1304_v14 = vmax.f32 %v1302_v32, %v1303_v58  ;;  %v1774_v49 = vadd.f32 %v3232_v3, %v1280_v50 }
 0x1b3   :  { %v1826_v23 = vadd.f32 %v3232_v3, %v1644_v13  ;;  %v1649_v57 = vmax.f32 %v1647_v40, %v1648_v30  ;;  %v1668_v43 = vmax.f32 %v1666_v46, %v1667_v21  ;;  %v1298_v60 = vrot.slane %v1297_v59, 2 }
 0x1b4   :  { %v1266_v17 = vmax.f32 %v1264_v0, %v1265_v28  ;;  %v1630_v29 = vmax.f32 %v1628_v19, %v1629_v53  ;;  %v1283_v47 = vmax.f32 %v1281_v7, %v1282_v4  ;;  %v1877_v6 = vmax.f32 %v1773_v5, 0.0 }
 0x1b5   :  { %v1929_v22 = vmax.f32 %v1825_v44, 0.0  ;;  %v1662_v37 = vrot.slane %v1661_v2, 2  ;;  %v1650_v20 = vrot.slane %v1649_v57, 1  ;;  %v1823_v51 = vadd.f32 %v3232_v3, %v1623_v61 }
 0x1b6   :  { %v1772_v12 = vadd.f32 %v3232_v3, %v1266_v17  ;;  %v1824_v10 = vadd.f32 %v3232_v3, %v1630_v29  ;;  %v1305_v35 = vrot.slane %v1304_v14, 2  ;;  %v1878_v18 = vmax.f32 %v1774_v49, 0.0  ;;  %v3642_v17 = vld [vmem:[#allocation28_spill] sm:$0xff] }
 0x1b7   :  { %v1930_v27 = vmax.f32 %v1826_v23, 0.0  ;;  %v1651_v56 = vmax.f32 %v1649_v57, %v1650_v20  ;;  %v1669_v63 = vrot.slane %v1668_v43, 2  ;;  %v1299_v62 = vmax.f32 %v1297_v59, %v1298_v60 }
 0x1b8   :  { %v1876_v32 = vmax.f32 %v1772_v12, 0.0  ;;  %v1928_v11 = vmax.f32 %v1824_v10, 0.0  ;;  %v1284_v15 = vrot.slane %v1283_v47, 2  ;;  %v2120_v7 = vrot.slane %v1877_v6, 2 }
 0x1b9   :  { %v2210_v5 = vrot.slane %v1929_v22, 6  ;;  %v1663_v58 = vmax.f32 %v1661_v2, %v1662_v37  ;;  %v1827_v50 = vadd.f32 %v3232_v3, %v1651_v56  ;;  %v1927_v13 = vmax.f32 %v1823_v51, 0.0 }
 0x1ba   :  { %v2118_v40 = vrot.slane %v1876_v32, 3  ;;  %v2208_v8 = vrot.slane %v1928_v11, 7  ;;  %v1306_v46 = vmax.f32 %v1304_v14, %v1305_v35  ;;  %v2122_v0 = vrot.slane %v1878_v18, 1 }
 0x1bb   :  { %v2212_v19 = vrot.slane %v1930_v27, 5  ;;  %v1931_v4 = vmax.f32 %v1827_v50, 0.0  ;;  %v1670_v44 = vmax.f32 %v1668_v43, %v1669_v63  ;;  %v1300_v59 = vrot.slane %v1299_v62, 1 }
 0x1bc   :  { %v2119_v30 = vsel %vm2060_vm8, %v2118_v40, %v3403_v39  ;;  %v2209_v21 = vsel %vm2048_vm4, %v2208_v8, %v1927_v13  ;;  %v1285_v61 = vmax.f32 %v1283_v47, %v1284_v15  ;;  %v1664_v53 = vrot.slane %v1663_v58, 1 }
 0x1bd   :  { %v2121_v28 = vsel %vm2063_vm9, %v2120_v7, %v2119_v30  ;;  %v2211_v2 = vsel %vm2051_vm5, %v2210_v5, %v2209_v21  ;;  %v2214_v49 = vrot.slane %v1931_v4, 4  ;;  %v1307_v57 = vrot.slane %v1306_v46, 1 }
 0x1be   :  { %v2123_v23 = vsel %vm2066_vm10, %v2122_v0, %v2121_v28  ;;  %v2213_v14 = vsel %vm2054_vm6, %v2212_v19, %v2211_v2  ;;  %v1288_v43 = vsel %vm1000_vm3, %v3642_v17, -inf  ;;  %v1671_v29 = vrot.slane %v1670_v44, 1 }
 0x1bf   :  { %2253 = vst.msk [vmem:[%s3581_s3 + $0x20] sm:$0xff] %vm1000_vm3, %v2123_v23  ;;  %v3443_v39 = vsel %vm2057_vm7, %v2214_v49, %v2213_v14  ;;  %v1289_v60 = vrot.slane %v1288_v43, 4  ;;  %v1652_v47 = vsel %vm1000_vm3, %v3161_v38, -inf  ;;  %v1323_v22 = vsel %vm1000_vm3, %v3179_v25, -inf }
 0x1c0   :  { %v1653_v6 = vrot.slane %v1652_v47, 4  ;;  %v1687_v37 = vsel %vm1000_vm3, %v3181_v33, -inf  ;;  %v1309_v20 = vsel %vm1000_vm3, %v3184_v41, -inf  ;;  %v1301_v51 = vmax.f32 %v1299_v62, %v1300_v59 }
 0x1c1   :  { %v1286_v12 = vrot.slane %v1285_v61, 1  ;;  %v1290_v10 = vmax.f32 %v1288_v43, %v1289_v60  ;;  %v1324_v35 = vrot.slane %v1323_v22, 4  ;;  %v1688_v27 = vrot.slane %v1687_v37, 4 }
 0x1c2   :  { %v1654_v18 = vmax.f32 %v1652_v47, %v1653_v6  ;;  %v1310_v56 = vrot.slane %v1309_v20, 4  ;;  %v1330_v38 = vsel %vm1000_vm3, %v3190_v9, -inf  ;;  %v1665_v63 = vmax.f32 %v1663_v58, %v1664_v53 }
 0x1c3   :  { %v1308_v32 = vmax.f32 %v1306_v46, %v1307_v57  ;;  %v1672_v11 = vmax.f32 %v1670_v44, %v1671_v29  ;;  %v1291_v25 = vrot.slane %v1290_v10, 2  ;;  %v1673_v33 = vsel %vm1000_vm3, %v3186_v36, -inf }
 0x1c4   :  { %v1655_v15 = vrot.slane %v1654_v18, 2  ;;  %v1311_v7 = vmax.f32 %v1309_v20, %v1310_v56  ;;  %v1694_v41 = vsel %vm1000_vm3, %v3192_v45, -inf  ;;  %v1777_v62 = vadd.f32 %v3232_v3, %v1301_v51 }
 0x1c5   :  { %v1292_v5 = vmax.f32 %v1290_v10, %v1291_v25  ;;  %v1325_v50 = vmax.f32 %v1323_v22, %v1324_v35  ;;  %v1331_v13 = vrot.slane %v1330_v38, 4  ;;  %v1689_v8 = vmax.f32 %v1687_v37, %v1688_v27 }
 0x1c6   :  { %v1656_v40 = vmax.f32 %v1654_v18, %v1655_v15  ;;  %v1312_v9 = vrot.slane %v1311_v7, 2  ;;  %v1695_v58 = vrot.slane %v1694_v41, 4  ;;  %v1829_v46 = vadd.f32 %v3232_v3, %v1665_v63 }
 0x1c7   :  { %v1287_v0 = vmax.f32 %v1285_v61, %v1286_v12  ;;  %v1293_v19 = vrot.slane %v1292_v5, 1  ;;  %v1674_v4 = vrot.slane %v1673_v33, 4  ;;  %v1778_v44 = vadd.f32 %v3232_v3, %v1308_v32 }
 0x1c8   :  { %v1830_v36 = vadd.f32 %v3232_v3, %v1672_v11  ;;  %v1657_v30 = vrot.slane %v1656_v40, 1  ;;  %v1313_v45 = vmax.f32 %v1311_v7, %v1312_v9  ;;  %v1326_v59 = vrot.slane %v1325_v50, 2 }
 0x1c9   :  { %v1294_v21 = vmax.f32 %v1292_v5, %v1293_v19  ;;  %v1332_v28 = vmax.f32 %v1330_v38, %v1331_v13  ;;  %v1696_v2 = vmax.f32 %v1694_v41, %v1695_v58  ;;  %v1881_v53 = vmax.f32 %v1777_v62, 0.0 }
 0x1ca   :  { %v1658_v49 = vmax.f32 %v1656_v40, %v1657_v30  ;;  %v1690_v23 = vrot.slane %v1689_v8, 2  ;;  %v1314_v14 = vrot.slane %v1313_v45, 1  ;;  %v1933_v57 = vmax.f32 %v1829_v46, 0.0  ;;  %v3643_v46 = vld [vmem:[#allocation21_spill] sm:$0xff] }
 0x1cb   :  { %v1775_v17 = vadd.f32 %v3232_v3, %v1287_v0  ;;  %v1776_v61 = vadd.f32 %v3232_v3, %v1294_v21  ;;  %v1675_v43 = vmax.f32 %v1673_v33, %v1674_v4  ;;  %v1882_v29 = vmax.f32 %v1778_v44, 0.0 }
 0x1cc   :  { %v1934_v60 = vmax.f32 %v1830_v36, 0.0  ;;  %v1828_v47 = vadd.f32 %v3232_v3, %v1658_v49  ;;  %v1315_v6 = vmax.f32 %v1313_v45, %v1314_v14  ;;  %v1327_v37 = vmax.f32 %v1325_v50, %v1326_v59 }
 0x1cd   :  { %v1880_v22 = vmax.f32 %v1776_v61, 0.0  ;;  %v1333_v20 = vrot.slane %v1332_v28, 2  ;;  %v1697_v51 = vrot.slane %v1696_v2, 2  ;;  %v2126_v12 = vrot.slane %v1881_v53, 6 }
 0x1ce   :  { %v1932_v10 = vmax.f32 %v1828_v47, 0.0  ;;  %v1691_v35 = vmax.f32 %v1689_v8, %v1690_v23  ;;  %v1779_v18 = vadd.f32 %v3232_v3, %v1315_v6  ;;  %v2218_v27 = vrot.slane %v1933_v57, 2  ;;  %v3645_v47 = vld [vmem:[#allocation2_spill] sm:$0xff] }
 0x1cf   :  { %v1879_v56 = vmax.f32 %v1775_v17, 0.0  ;;  %v2124_v38 = vrot.slane %v1880_v22, 7  ;;  %v1676_v63 = vrot.slane %v1675_v43, 2  ;;  %v2128_v32 = vrot.slane %v1882_v29, 5  ;;  %v3511_v6 = vld [vmem:[%s3580_s2] ss:$0 sm:$0xff] }
 0x1d0   :  { %v2220_v11 = vrot.slane %v1934_v60, 1  ;;  %v2216_v25 = vrot.slane %v1932_v10, 3  ;;  %v1883_v15 = vmax.f32 %v1779_v18, 0.0  ;;  %v1328_v33 = vrot.slane %v1327_v37, 1 }
 0x1d1   :  { %v2125_v7 = vsel %vm2048_vm4, %v2124_v38, %v1879_v56  ;;  %v1334_v41 = vmax.f32 %v1332_v28, %v1333_v20  ;;  %v1698_v62 = vmax.f32 %v1696_v2, %v1697_v51  ;;  %v1692_v13 = vrot.slane %v1691_v35, 1 }
 0x1d2   :  { %v2127_v5 = vsel %vm2051_vm5, %v2126_v12, %v2125_v7  ;;  %v2217_v50 = vsel %vm2060_vm8, %v2216_v25, %v3443_v39  ;;  %v2130_v3 = vrot.slane %v1883_v15, 4  ;;  %v1677_v9 = vmax.f32 %v1675_v43, %v1676_v63 }
 0x1d3   :  { %v2219_v40 = vsel %vm2063_vm9, %v2218_v27, %v2217_v50  ;;  %v2129_v8 = vsel %vm2054_vm6, %v2128_v32, %v2127_v5  ;;  %v1316_v58 = vsel %vm1000_vm3, %v3195_v16, -inf  ;;  %v1389_v0 = vrot.slane %v3643_v46, 2 }
 0x1d4   :  { %v2221_v19 = vsel %vm2066_vm10, %v2220_v11, %v2219_v40  ;;  %v3478_v4 = vsel %vm2057_vm7, %v2130_v3, %v2129_v8  ;;  %v1317_v44 = vrot.slane %v1316_v58, 4  ;;  %v3644_v39 = vrot.slane %v3001_v54, 2 }
 0x1d5   :  { %2260 = vst.msk [vmem:[%s3581_s3 + $0x58] sm:$0xff] %vm1000_vm3, %v2221_v19  ;;  %v1335_v30 = vrot.slane %v1334_v41, 1  ;;  %v1699_v16 = vrot.slane %v1698_v62, 1  ;;  %v1680_v45 = vsel %vm1000_vm3, %v3218_v34, -inf  ;;  %v3494_v21 = vmax.f32 %v3330_v48, %v1375_v42 }
 0x1d6   :  { %v3483_v36 = vmax.f32 %v3001_v54, %v3644_v39  ;;  %v1329_v59 = vmax.f32 %v1327_v37, %v1328_v33  ;;  %v1318_v28 = vmax.f32 %v1316_v58, %v1317_v44  ;;  %v1681_v2 = vrot.slane %v1680_v45, 4 }
 0x1d7   :  { %v1693_v54 = vmax.f32 %v1691_v35, %v1692_v13  ;;  %v1678_v53 = vrot.slane %v1677_v9, 1  ;;  %v1351_v49 = vsel %vm1000_vm3, %v3242_v26, -inf  ;;  %v1701_v23 = vsel %vm1000_vm3, %v3248_v55, -inf }
 0x1d8   :  { %v1319_v14 = vrot.slane %v1318_v28, 2  ;;  %v1682_v57 = vmax.f32 %v1680_v45, %v1681_v2  ;;  %v1715_v34 = vsel %vm1000_vm3, %v3244_v1, -inf  ;;  %v1358_v48 = vsel %vm1000_vm3, %v3252_v52, -inf }
 0x1d9   :  { %v1336_v42 = vmax.f32 %v1334_v41, %v1335_v30  ;;  %v1700_v17 = vmax.f32 %v1698_v62, %v1699_v16  ;;  %v1337_v61 = vsel %vm1000_vm3, %v3246_v24, -inf  ;;  %v1702_v43 = vrot.slane %v1701_v23, 4 }
 0x1da   :  { %v1320_v29 = vmax.f32 %v1318_v28, %v1319_v14  ;;  %v1683_v60 = vrot.slane %v1682_v57, 2  ;;  %v1352_v26 = vrot.slane %v1351_v49, 4  ;;  %v1722_v55 = vsel %vm1000_vm3, %v3645_v47, -inf  ;;  %v3646_v47 = vld [vmem:[#allocation29_spill] sm:$0xff] }
 0x1db   :  { %v1781_v1 = vadd.f32 %v3511_v6, %v1329_v59  ;;  %v1716_v52 = vrot.slane %v1715_v34, 4  ;;  %v1703_v22 = vmax.f32 %v1701_v23, %v1702_v43  ;;  %v1359_v37 = vrot.slane %v1358_v48, 4 }
 0x1dc   :  { %v1833_v20 = vadd.f32 %v3511_v6, %v1693_v54  ;;  %v1321_v24 = vrot.slane %v1320_v29, 1  ;;  %v1684_v51 = vmax.f32 %v1682_v57, %v1683_v60  ;;  %v1338_v12 = vrot.slane %v1337_v61, 4 }
 0x1dd   :  { %v1679_v10 = vmax.f32 %v1677_v9, %v1678_v53  ;;  %v1782_v35 = vadd.f32 %v3511_v6, %v1336_v42  ;;  %v1704_v18 = vrot.slane %v1703_v22, 2  ;;  %v1723_v27 = vrot.slane %v1722_v55, 4 }
 0x1de   :  { %v1834_v56 = vadd.f32 %v3511_v6, %v1700_v17  ;;  %v1322_v38 = vmax.f32 %v1320_v29, %v1321_v24  ;;  %v1685_v63 = vrot.slane %v1684_v51, 1  ;;  %v1353_v32 = vmax.f32 %v1351_v49, %v1352_v26 }
 0x1df   :  { %v1885_v11 = vmax.f32 %v1781_v1, 0.0  ;;  %v1717_v25 = vmax.f32 %v1715_v34, %v1716_v52  ;;  %v1705_v15 = vmax.f32 %v1703_v22, %v1704_v18  ;;  %v1360_v7 = vmax.f32 %v1358_v48, %v1359_v37 }
 0x1e0   :  { %v1937_v33 = vmax.f32 %v1833_v20, 0.0  ;;  %v1780_v41 = vadd.f32 %v3511_v6, %v1322_v38  ;;  %v1686_v62 = vmax.f32 %v1684_v51, %v1685_v63  ;;  %v1339_v5 = vmax.f32 %v1337_v61, %v1338_v12  ;;  %v3647_v51 = vld [vmem:[#allocation3_spill] sm:$0xff] }
 0x1e1   :  { %v1831_v50 = vadd.f32 %v3511_v6, %v1679_v10  ;;  %v1886_v13 = vmax.f32 %v1782_v35, 0.0  ;;  %v1706_v3 = vrot.slane %v1705_v15, 1  ;;  %v1724_v40 = vmax.f32 %v1722_v55, %v1723_v27 }
 0x1e2   :  { %v1938_v8 = vmax.f32 %v1834_v56, 0.0  ;;  %v1884_v9 = vmax.f32 %v1780_v41, 0.0  ;;  %v1832_v58 = vadd.f32 %v3511_v6, %v1686_v62  ;;  %v1354_v19 = vrot.slane %v1353_v32, 2 }
 0x1e3   :  { %v2134_v44 = vrot.slane %v1885_v11, 2  ;;  %v1718_v39 = vrot.slane %v1717_v25, 2  ;;  %v1707_v30 = vmax.f32 %v1705_v15, %v1706_v3  ;;  %v1361_v16 = vrot.slane %v1360_v7, 2 }
 0x1e4   :  { %v2224_v45 = vrot.slane %v1937_v33, 6  ;;  %v2132_v59 = vrot.slane %v1884_v9, 3  ;;  %v1936_v28 = vmax.f32 %v1832_v58, 0.0  ;;  %v1340_v2 = vrot.slane %v1339_v5, 2 }
 0x1e5   :  { %v1935_v54 = vmax.f32 %v1831_v50, 0.0  ;;  %v2136_v53 = vrot.slane %v1886_v13, 1  ;;  %v1835_v49 = vadd.f32 %v3511_v6, %v1707_v30  ;;  %v1725_v23 = vrot.slane %v1724_v40, 2 }
 0x1e6   :  { %v2226_v14 = vrot.slane %v1938_v8, 5  ;;  %v2133_v57 = vsel %vm2060_vm8, %v2132_v59, %v3478_v4  ;;  %v2222_v34 = vrot.slane %v1936_v28, 7  ;;  %v1355_v48 = vmax.f32 %v1353_v32, %v1354_v19 }
 0x1e7   :  { %v2135_v42 = vsel %vm2063_vm9, %v2134_v44, %v2133_v57  ;;  %v1719_v17 = vmax.f32 %v1717_v25, %v1718_v39  ;;  %v1939_v61 = vmax.f32 %v1835_v49, 0.0  ;;  %v1362_v43 = vmax.f32 %v1360_v7, %v1361_v16 }
 0x1e8   :  { %v2137_v29 = vsel %vm2066_vm10, %v2136_v53, %v2135_v42  ;;  %v2223_v60 = vsel %vm2048_vm4, %v2222_v34, %v1935_v54  ;;  %v1341_v26 = vmax.f32 %v1339_v5, %v1340_v2  ;;  %v1344_v55 = vsel %vm1000_vm3, %v3646_v47, -inf }
 0x1e9   :  { %2254 = vst.msk [vmem:[%s3581_s3 + $0x28] sm:$0xff] %vm1000_vm3, %v2137_v29  ;;  %v2225_v4 = vsel %vm2051_vm5, %v2224_v45, %v2223_v60  ;;  %v2228_v1 = vrot.slane %v1939_v61, 4  ;;  %v1726_v52 = vmax.f32 %v1724_v40, %v1725_v23  ;;  %v1345_v22 = vrot.slane %v1344_v55, 4 }
 0x1ea   :  { %v1390_v37 = vmax.f32 %v3643_v46, %v1389_v0  ;;  %v1356_v20 = vrot.slane %v1355_v48, 1  ;;  %v2227_v24 = vsel %vm2054_vm6, %v2226_v14, %v2225_v4  ;;  %v1708_v12 = vsel %vm1000_vm3, %v3647_v51, -inf }
 0x1eb   :  { %v3540_v10 = vsel %vm2057_vm7, %v2228_v1, %v2227_v24  ;;  %v1363_v35 = vrot.slane %v1362_v43, 1  ;;  %v1346_v18 = vmax.f32 %v1344_v55, %v1345_v22  ;;  %v1709_v27 = vrot.slane %v1708_v12, 4 }
 0x1ec   :  { %v1370_v56 = vrot.slane %v3483_v36, 1  ;;  %v1377_v38 = vrot.slane %v3494_v21, 1  ;;  %v1720_v63 = vrot.slane %v1719_v17, 1  ;;  %v1342_v32 = vrot.slane %v1341_v26, 1 }
 0x1ed   :  { %v1727_v11 = vrot.slane %v1726_v52, 1  ;;  %v1347_v46 = vrot.slane %v1346_v18, 2  ;;  %v1710_v0 = vmax.f32 %v1708_v12, %v1709_v27  ;;  %v1384_v25 = vrot.slane %v3318_v31, 1 }
 0x1ee   :  { %v1357_v15 = vmax.f32 %v1355_v48, %v1356_v20  ;;  %v1391_v7 = vrot.slane %v1390_v37, 1  ;;  %v1364_v33 = vmax.f32 %v1362_v43, %v1363_v35  ;;  %v1371_v5 = vmax.f32 %v3483_v36, %v1370_v56 }
 0x1ef   :  { %v1348_v41 = vmax.f32 %v1346_v18, %v1347_v46  ;;  %v1711_v62 = vrot.slane %v1710_v0, 2  ;;  %v1378_v50 = vmax.f32 %v3494_v21, %v1377_v38  ;;  %v1721_v13 = vmax.f32 %v1719_v17, %v1720_v63 }
 0x1f0   :  { %v1343_v3 = vmax.f32 %v1341_v26, %v1342_v32  ;;  %v1728_v40 = vmax.f32 %v1726_v52, %v1727_v11  ;;  %v1385_v58 = vmax.f32 %v3318_v31, %v1384_v25  ;;  %v1785_v19 = vadd.f32 %v3511_v6, %v1357_v15 }
 0x1f1   :  { %v1349_v8 = vrot.slane %v1348_v41, 1  ;;  %v1712_v9 = vmax.f32 %v1710_v0, %v1711_v62  ;;  %v1392_v44 = vmax.f32 %v1390_v37, %v1391_v7  ;;  %v1786_v39 = vadd.f32 %v3511_v6, %v1364_v33 }
 0x1f2   :  { %v1787_v45 = vadd.f32 %v3511_v6, %v1371_v5  ;;  %v1788_v36 = vadd.f32 %v3511_v6, %v1378_v50  ;;  %v1837_v21 = vadd.f32 %v3511_v6, %v1721_v13  ;;  %v1783_v59 = vadd.f32 %v3511_v6, %v1343_v3 }
 0x1f3   :  { %v1350_v30 = vmax.f32 %v1348_v41, %v1349_v8  ;;  %v1713_v16 = vrot.slane %v1712_v9, 1  ;;  %v1838_v28 = vadd.f32 %v3511_v6, %v1728_v40  ;;  %v1789_v54 = vadd.f32 %v3511_v6, %v1385_v58 }
 0x1f4   :  { %v1889_v53 = vmax.f32 %v1785_v19, 0.0  ;;  %v1790_v49 = vadd.f32 %v3511_v6, %v1392_v44  ;;  %v1890_v23 = vmax.f32 %v1786_v39, 0.0  ;;  %v1891_v34 = vmax.f32 %v1787_v45, 0.0 }
 0x1f5   :  { %v1784_v2 = vadd.f32 %v3511_v6, %v1350_v30  ;;  %v1714_v31 = vmax.f32 %v1712_v9, %v1713_v16  ;;  %v1892_v48 = vmax.f32 %v1788_v36, 0.0  ;;  %v1941_v42 = vmax.f32 %v1837_v21, 0.0 }
 0x1f6   :  { %v1887_v17 = vmax.f32 %v1783_v59, 0.0  ;;  %v1942_v61 = vmax.f32 %v1838_v28, 0.0  ;;  %v1893_v60 = vmax.f32 %v1789_v54, 0.0  ;;  %v2140_v26 = vrot.slane %v1889_v53, 6 }
 0x1f7   :  { %v1888_v14 = vmax.f32 %v1784_v2, 0.0  ;;  %v1836_v57 = vadd.f32 %v3511_v6, %v1714_v31  ;;  %v1894_v47 = vmax.f32 %v1790_v49, 0.0  ;;  %v2142_v55 = vrot.slane %v1890_v23, 5 }
 0x1f8   :  { %v2144_v52 = vrot.slane %v1891_v34, 4  ;;  %v2232_v22 = vrot.slane %v1941_v42, 2  ;;  %v2146_v20 = vrot.slane %v1892_v48, 3  ;;  %v2234_v6 = vrot.slane %v1942_v61, 1 }
 0x1f9   :  { %v2138_v43 = vrot.slane %v1888_v14, 7  ;;  %v1940_v29 = vmax.f32 %v1836_v57, 0.0  ;;  %v2148_v12 = vrot.slane %v1893_v60, 2  ;;  %v2150_v27 = vrot.slane %v1894_v47, 1 }
 0x1fb   :  { %v2139_v4 = vsel %vm2048_vm4, %v2138_v43, %v1887_v17  ;;  %v2230_v1 = vrot.slane %v1940_v29, 3 }
 0x1fc   :  { %v2141_v37 = vsel %vm2051_vm5, %v2140_v26, %v2139_v4 }
 0x1fd   :  { %v2143_v24 = vsel %vm2054_vm6, %v2142_v55, %v2141_v37  ;;  %v2231_v51 = vsel %vm2060_vm8, %v2230_v1, %v3540_v10 }
 0x1fe   :  { %v2145_v35 = vsel %vm2057_vm7, %v2144_v52, %v2143_v24  ;;  %v2233_v18 = vsel %vm2063_vm9, %v2232_v22, %v2231_v51 }
 0x1ff   :  { %v2147_v56 = vsel %vm2060_vm8, %v2146_v20, %v2145_v35  ;;  %v2235_v38 = vsel %vm2066_vm10, %v2234_v6, %v2233_v18 }
 0x200   :  { %v2149_v63 = vsel %vm2063_vm9, %v2148_v12, %v2147_v56  ;;  %2261 = vst.msk [vmem:[%s3581_s3 + $0x60] sm:$0xff] %vm1000_vm3, %v2235_v38 }
 0x201   :  { %v2151_v32 = vsel %vm2066_vm10, %v2150_v27, %v2149_v63 }
 0x202   :  { %2255 = vst.msk [vmem:[%s3581_s3 + $0x30] sm:$0xff] %vm1000_vm3, %v2151_v32 }

</bundles_post_ra>
